<compile_context>
chip_gen: v7x
topology: tpu7x:2x2x1
jax: 0.10.0
libtpu: 0.0.40
codegen_flags: <defaults>
</compile_context>

<pallas_src>
import jax
import jax.numpy as jnp
from jax.experimental import pallas as pl
from jax.experimental.pallas import tpu as pltpu

LEAKY_SLOPE = 0.01   # nn.LeakyReLU default
BN_EPS = 1e-5        # nn.BatchNorm2d default

# Layer geometry: 1x32x32 -> 3x16x16 -> 9x8x8 -> 18x4x4 -> Linear(288, 128)
LAYERS = [           # (H, W, C_in, C_out) per conv
    (32, 32, 1, 3),
    (16, 16, 3, 9),
    (8, 8, 9, 18),
]
D_IN = 32 * 32       # 1024 flattened input width
D3 = 18 * 4 * 4      # 288  Flatten width
D_OUT = 128          # Linear output width


def _round_up(n, m):
    return ((n + m - 1) // m) * m


# ----------------------------------------------------------------------------
# One-time parameter preprocessing (outside the hot path)
# ----------------------------------------------------------------------------
def conv_bn_banded(w, b_conv, gamma, beta, rmean, rvar, H, W):
    """Fold Conv2d(k=3, s=2, p=1) + BatchNorm2d (eval mode) into per-output-row
    banded matmul blocks.

    Activation layout on both sides of every conv is the row-major flatten of
    (h, c, w).  Output row `ho` only reads input rows hi in {2ho-1, 2ho, 2ho+1},
    i.e. a contiguous 3*C_in*W slice of the flattened input, so we store just a
    (3*C_in*W, C_out*Wo) block per ho (border taps become zero weight rows).
    """
    C_out, C_in, kH, kW = w.shape
    Ho, Wo = H // 2, W // 2
    CW = C_in * W
    # Width-densified per-tap weight:
    #   T[dh, (ci, wi), (co, wo)] = sum_dw w[co, ci, dh, dw] * [wi == 2*wo + dw - 1]
    wi = jnp.arange(W)
    wo = jnp.arange(Wo)
    dw = jnp.arange(kW)
    sel_w = (wi[:, None, None] == 2 * wo[None, :, None] + dw[None, None, :] - 1)
    T = jnp.einsum("oidj,vqj->divoq", w.astype(jnp.float32), sel_w.astype(jnp.float32))
    T = T.reshape(kH, CW, C_out * Wo)
    # Fold BatchNorm (running stats) + conv bias.  Scale folds into the bf16 weights
    # (relative precision of bf16 is scale-invariant); bias stays in the f32 epilogue.
    inv_std = 1.0 / jnp.sqrt(rvar + BN_EPS)
    scale_c = gamma * inv_std
    bias_c = (b_conv - rmean) * scale_c + beta
    T = T * jnp.repeat(scale_c, Wo)[None, None, :]
    # One (3*CW, C_out*Wo) block per output row ho.
    blocks = []
    for ho in range(Ho):
        hstart = min(max(2 * ho - 1, 0), H - 3)       # same band start the kernel uses
        rows = []
        for r in range(3):
            dh = hstart + r - (2 * ho - 1)            # tap index for input row hstart+r
            rows.append(T[dh] if 0 <= dh < kH else jnp.zeros_like(T[0]))
        blocks.append(jnp.concatenate(rows, axis=0))
    wb = jnp.stack(blocks, axis=0)                               # (Ho, 3*CW, C_out*Wo)
    bias = jnp.tile(jnp.repeat(bias_c, Wo), Ho).reshape(1, -1)   # (1, Ho*C_out*Wo)
    return wb.astype(jnp.bfloat16), bias.astype(jnp.float32)


def prepare_encoder_params(p):
    """Build banded conv+BN blocks, permute/cast the Linear weight.  Runs once."""
    out = {}
    for l, (H, W, _, _) in enumerate(LAYERS, start=1):
        wb, bias = conv_bn_banded(p[f"w{l}"], p[f"b{l}"], p[f"gamma{l}"], p[f"beta{l}"],
                                  p[f"rmean{l}"], p[f"rvar{l}"], H, W)
        out[f"wb{l}"] = wb
        out[f"b{l}"] = bias
    # PyTorch Flatten is (c, h, w) order; our conv-3 output is (h, c, w), so permute
    # the Linear weight's input axis once here (not per call).
    lin_w = p["lin_w"].reshape(D_OUT, 18, 4, 4).transpose(0, 2, 1, 3).reshape(D_OUT, D3)
    out["w4"] = lin_w.T.astype(jnp.bfloat16)                     # (288, 128) rows = (h, c, w)
    out["b4"] = p["lin_b"].reshape(1, D_OUT).astype(jnp.float32)
    return out


# ----------------------------------------------------------------------------
# Pallas kernel: whole encoder fused, weights VMEM-resident across the M grid
# ----------------------------------------------------------------------------
def _encoder_kernel(x_ref, wb1_ref, b1_ref, wb2_ref, b2_ref, wb3_ref, b3_ref,
                    w4_ref, b4_ref, o_ref):
    def conv_block(h, wb_ref, b_ref, H, W, C_in):
        Ho, CW = H // 2, C_in * W
        h_bf = h.astype(jnp.bfloat16)
        cols = []
        for ho in range(Ho):                              # static unroll: 16 / 8 / 4 blocks
            s = min(max(2 * ho - 1, 0), H - 3) * CW       # static, contiguous lane band
            band = h_bf[:, s:s + 3 * CW]
            cols.append(jnp.dot(band, wb_ref[ho],         # MXU, f32 accumulation
                                preferred_element_type=jnp.float32))
        y = jnp.concatenate(cols, axis=1) + b_ref[...]    # f32 bias epilogue
        return jnp.maximum(y, LEAKY_SLOPE * y)            # LeakyReLU: one vmul + vmax

    h = conv_block(x_ref[...], wb1_ref, b1_ref, 32, 32, 1)   # conv1 + BN + LeakyReLU
    h = conv_block(h, wb2_ref, b2_ref, 16, 16, 3)            # conv2 + BN + LeakyReLU
    h = conv_block(h, wb3_ref, b3_ref, 8, 8, 9)              # conv3 + BN + LeakyReLU
    y = jnp.dot(h.astype(jnp.bfloat16), w4_ref[...],         # Flatten + Linear
                preferred_element_type=jnp.float32)
    o_ref[...] = y + b4_ref[...]


def _encoder_pallas(x2d, wp, TM):
    Mp = x2d.shape[0]
    row = lambda m: (m, 0)          # x / out tiles march over the batch
    c2 = lambda m: (0, 0)           # weights/biases: constant block -> DMA'd once,
    c3 = lambda m: (0, 0, 0)        # revisited across all grid steps

    def wspec(a):
        return pl.BlockSpec(tuple(a.shape), c3 if a.ndim == 3 else c2)

    args = (x2d, wp["wb1"], wp["b1"], wp["wb2"], wp["b2"],
            wp["wb3"], wp["b3"], wp["w4"], wp["b4"])
    in_specs = [pl.BlockSpec((TM, D_IN), row)] + [wspec(a) for a in args[1:]]
    return pl.pallas_call(
        _encoder_kernel,
        out_shape=jax.ShapeDtypeStruct((Mp, D_OUT), jnp.float32),
        grid=(Mp // TM,),
        in_specs=in_specs,
        out_specs=pl.BlockSpec((TM, D_OUT), row),
        compiler_params=pltpu.CompilerParams(
            dimension_semantics=("parallel",)),       # v7x: split batch tiles across TCs
    )(*args)


@jax.jit
def auto_edcoder_forward(x_nchw, wp):
    B, C, H, W = x_nchw.shape
    assert (C, H, W) == (1, 32, 32), "encoder hard-codes 1x32x32 input (Linear(18*4*4, 128))"
    TM = 128 if B >= 128 else _round_up(B, 8)          # static under jit
    Mp = _round_up(B, TM)
    x2d = x_nchw.reshape(B, D_IN).astype(jnp.bfloat16)  # (h, c, w) flatten (C=1)
    if Mp != B:
        x2d = jnp.pad(x2d, ((0, Mp - B), (0, 0)))      # single pad op (no zeros + DUS)
    return _encoder_pallas(x2d, wp, TM)[:B]            # (B, 128) f32


# ----------------------------------------------------------------------------
# Parameter construction (deterministic, synthetic — no checkpoint loading)
# ----------------------------------------------------------------------------
def init_params():
    keys = jax.random.split(jax.random.PRNGKey(42), 16)
    p = {}

    def conv_block(i, c_in, c_out, k0):
        fan_in = c_in * 3 * 3
        p[f"w{i}"] = jax.random.normal(keys[k0], (c_out, c_in, 3, 3), jnp.float32) / jnp.sqrt(fan_in)
        p[f"b{i}"] = jax.random.normal(keys[k0 + 1], (c_out,), jnp.float32) * 0.1
        p[f"gamma{i}"] = 1.0 + 0.1 * jax.random.normal(keys[k0 + 2], (c_out,), jnp.float32)
        p[f"beta{i}"] = 0.1 * jax.random.normal(keys[k0 + 3], (c_out,), jnp.float32)
        # TODO(synk): training-mode BatchNorm (batch statistics) not implemented in-kernel.
        p[f"rmean{i}"] = jnp.zeros((c_out,), jnp.float32)
        p[f"rvar{i}"] = jnp.ones((c_out,), jnp.float32)

    conv_block(1, 1, 3, 0)
    conv_block(2, 3, 9, 4)
    conv_block(3, 9, 18, 8)
    p["lin_w"] = jax.random.normal(keys[12], (D_OUT, D3), jnp.float32) / jnp.sqrt(float(D3))
    p["lin_b"] = jax.random.normal(keys[13], (D_OUT,), jnp.float32) * 0.1
    return p


# ----------------------------------------------------------------------------
# Pure-JAX f32 reference (validation only; mirrors the PyTorch module in eval mode)
# ----------------------------------------------------------------------------
def reference_forward(x, p):
    def block(h, i):
        w, b = p[f"w{i}"], p[f"b{i}"]
        g, bt = p[f"gamma{i}"], p[f"beta{i}"]
        rm, rv = p[f"rmean{i}"], p[f"rvar{i}"]
        y = jax.lax.conv_general_dilated(h, w, (2, 2), [(1, 1), (1, 1)],
                                         dimension_numbers=("NCHW", "OIHW", "NCHW"))
        y = y + b.reshape(1, -1, 1, 1)
        y = (y - rm.reshape(1, -1, 1, 1)) * (g.reshape(1, -1, 1, 1) /
             jnp.sqrt(rv.reshape(1, -1, 1, 1) + BN_EPS)) + bt.reshape(1, -1, 1, 1)
        return jnp.where(y >= 0, y, LEAKY_SLOPE * y)

    h = block(x, 1)
    h = block(h, 2)
    h = block(h, 3)
    flat = h.reshape(h.shape[0], -1)
    return flat @ p["lin_w"].T + p["lin_b"]


if __name__ == "__main__":
    # Input: 1 channel, 32x32 spatial (three stride-2 convs -> 4x4, matching 18*4*4).
    x = jax.random.normal(jax.random.PRNGKey(0), (2, 1, 32, 32), jnp.float32)
    params = init_params()
    wp = prepare_encoder_params(params)     # one-time weight preprocessing

    code = jax.block_until_ready(auto_edcoder_forward(x, wp))
    assert code.shape == (2, 128), code.shape
    assert bool(jnp.all(jnp.isfinite(code)))

    # Validate against the pure-JAX f32 reference (loose tolerance: bf16 MXU operands
    # and bf16 inter-layer activation casts).
    ref = reference_forward(x, params)
    err = float(jnp.max(jnp.abs(code - ref)))
    assert bool(jnp.allclose(code, ref, rtol=0.1, atol=0.1)), err

    print("KERNEL_OK")
</pallas_src>

<mosaic_0001>
module attributes {stable_mosaic.version = 11 : i64} {
  func.func @_encoder_kernel(%arg0: i32, %arg1: memref<8x1024xbf16, #tpu.memory_space<vmem>>, %arg2: memref<16x96x48xbf16, #tpu.memory_space<vmem>>, %arg3: memref<1x768xf32, #tpu.memory_space<vmem>>, %arg4: memref<8x144x72xbf16, #tpu.memory_space<vmem>>, %arg5: memref<1x576xf32, #tpu.memory_space<vmem>>, %arg6: memref<4x216x72xbf16, #tpu.memory_space<vmem>>, %arg7: memref<1x288xf32, #tpu.memory_space<vmem>>, %arg8: memref<288x128xbf16, #tpu.memory_space<vmem>>, %arg9: memref<1x128xf32, #tpu.memory_space<vmem>>, %arg10: memref<8x128xf32, #tpu.memory_space<vmem>>) attributes {dimension_semantics = [#tpu.dimension_semantics<parallel>], iteration_bounds = array<i64: 1>, scalar_prefetch = 0 : i64, scratch_operands = 0 : i64, tpu.core_type = #tpu.core_type<tc>, window_params = [{transform_indices = @transform_0, window_bounds = array<i64: 8, 1024>}, {pipeline_mode = #tpu.pipeline_mode<synchronous>, transform_indices = @transform_1, window_bounds = array<i64: 16, 96, 48>}, {pipeline_mode = #tpu.pipeline_mode<synchronous>, transform_indices = @transform_2, window_bounds = array<i64: 1, 768>}, {pipeline_mode = #tpu.pipeline_mode<synchronous>, transform_indices = @transform_3, window_bounds = array<i64: 8, 144, 72>}, {pipeline_mode = #tpu.pipeline_mode<synchronous>, transform_indices = @transform_4, window_bounds = array<i64: 1, 576>}, {pipeline_mode = #tpu.pipeline_mode<synchronous>, transform_indices = @transform_5, window_bounds = array<i64: 4, 216, 72>}, {pipeline_mode = #tpu.pipeline_mode<synchronous>, transform_indices = @transform_6, window_bounds = array<i64: 1, 288>}, {pipeline_mode = #tpu.pipeline_mode<synchronous>, transform_indices = @transform_7, window_bounds = array<i64: 288, 128>}, {pipeline_mode = #tpu.pipeline_mode<synchronous>, transform_indices = @transform_8, window_bounds = array<i64: 1, 128>}, {transform_indices = @transform_9, window_bounds = array<i64: 8, 128>}]} {
    %c0 = arith.constant 0 : index
    %c0_0 = arith.constant 0 : index
    %0 = vector.load %arg1[%c0, %c0_0] : memref<8x1024xbf16, #tpu.memory_space<vmem>>, vector<8x1024xbf16>
    %1 = vector.extract_strided_slice %0 {offsets = [0, 0], sizes = [8, 96], strides = [1, 1]} : vector<8x1024xbf16> to vector<8x96xbf16>
    %c0_1 = arith.constant 0 : index
    %c0_2 = arith.constant 0 : index
    %c0_3 = arith.constant 0 : index
    %2 = vector.load %arg2[%c0_1, %c0_2, %c0_3] : memref<16x96x48xbf16, #tpu.memory_space<vmem>>, vector<1x96x48xbf16>
    %3 = vector.shape_cast %2 : vector<1x96x48xbf16> to vector<96x48xbf16>
    %cst = arith.constant dense<0.000000e+00> : vector<8x48xf32>
    %4 = tpu.matmul %1, %3, %cst {dimension_numbers = #tpu.dot_dimension_numbers<[1], [0], [0], [1], [0, 0, 1, 1], [], []>} : vector<8x96xbf16>, vector<96x48xbf16>, vector<8x48xf32> -> vector<8x48xf32>
    %5 = vector.extract_strided_slice %0 {offsets = [0, 32], sizes = [8, 96], strides = [1, 1]} : vector<8x1024xbf16> to vector<8x96xbf16>
    %c1 = arith.constant 1 : index
    %c0_4 = arith.constant 0 : index
    %c0_5 = arith.constant 0 : index
    %6 = vector.load %arg2[%c1, %c0_4, %c0_5] : memref<16x96x48xbf16, #tpu.memory_space<vmem>>, vector<1x96x48xbf16>
    %7 = vector.shape_cast %6 : vector<1x96x48xbf16> to vector<96x48xbf16>
    %cst_6 = arith.constant dense<0.000000e+00> : vector<8x48xf32>
    %8 = tpu.matmul %5, %7, %cst_6 {dimension_numbers = #tpu.dot_dimension_numbers<[1], [0], [0], [1], [0, 0, 1, 1], [], []>} : vector<8x96xbf16>, vector<96x48xbf16>, vector<8x48xf32> -> vector<8x48xf32>
    %9 = vector.extract_strided_slice %0 {offsets = [0, 96], sizes = [8, 96], strides = [1, 1]} : vector<8x1024xbf16> to vector<8x96xbf16>
    %c2 = arith.constant 2 : index
    %c0_7 = arith.constant 0 : index
    %c0_8 = arith.constant 0 : index
    %10 = vector.load %arg2[%c2, %c0_7, %c0_8] : memref<16x96x48xbf16, #tpu.memory_space<vmem>>, vector<1x96x48xbf16>
    %11 = vector.shape_cast %10 : vector<1x96x48xbf16> to vector<96x48xbf16>
    %cst_9 = arith.constant dense<0.000000e+00> : vector<8x48xf32>
    %12 = tpu.matmul %9, %11, %cst_9 {dimension_numbers = #tpu.dot_dimension_numbers<[1], [0], [0], [1], [0, 0, 1, 1], [], []>} : vector<8x96xbf16>, vector<96x48xbf16>, vector<8x48xf32> -> vector<8x48xf32>
    %13 = vector.extract_strided_slice %0 {offsets = [0, 160], sizes = [8, 96], strides = [1, 1]} : vector<8x1024xbf16> to vector<8x96xbf16>
    %c3 = arith.constant 3 : index
    %c0_10 = arith.constant 0 : index
    %c0_11 = arith.constant 0 : index
    %14 = vector.load %arg2[%c3, %c0_10, %c0_11] : memref<16x96x48xbf16, #tpu.memory_space<vmem>>, vector<1x96x48xbf16>
    %15 = vector.shape_cast %14 : vector<1x96x48xbf16> to vector<96x48xbf16>
    %cst_12 = arith.constant dense<0.000000e+00> : vector<8x48xf32>
    %16 = tpu.matmul %13, %15, %cst_12 {dimension_numbers = #tpu.dot_dimension_numbers<[1], [0], [0], [1], [0, 0, 1, 1], [], []>} : vector<8x96xbf16>, vector<96x48xbf16>, vector<8x48xf32> -> vector<8x48xf32>
    %17 = vector.extract_strided_slice %0 {offsets = [0, 224], sizes = [8, 96], strides = [1, 1]} : vector<8x1024xbf16> to vector<8x96xbf16>
    %c4 = arith.constant 4 : index
    %c0_13 = arith.constant 0 : index
    %c0_14 = arith.constant 0 : index
    %18 = vector.load %arg2[%c4, %c0_13, %c0_14] : memref<16x96x48xbf16, #tpu.memory_space<vmem>>, vector<1x96x48xbf16>
    %19 = vector.shape_cast %18 : vector<1x96x48xbf16> to vector<96x48xbf16>
    %cst_15 = arith.constant dense<0.000000e+00> : vector<8x48xf32>
    %20 = tpu.matmul %17, %19, %cst_15 {dimension_numbers = #tpu.dot_dimension_numbers<[1], [0], [0], [1], [0, 0, 1, 1], [], []>} : vector<8x96xbf16>, vector<96x48xbf16>, vector<8x48xf32> -> vector<8x48xf32>
    %21 = vector.extract_strided_slice %0 {offsets = [0, 288], sizes = [8, 96], strides = [1, 1]} : vector<8x1024xbf16> to vector<8x96xbf16>
    %c5 = arith.constant 5 : index
    %c0_16 = arith.constant 0 : index
    %c0_17 = arith.constant 0 : index
    %22 = vector.load %arg2[%c5, %c0_16, %c0_17] : memref<16x96x48xbf16, #tpu.memory_space<vmem>>, vector<1x96x48xbf16>
    %23 = vector.shape_cast %22 : vector<1x96x48xbf16> to vector<96x48xbf16>
    %cst_18 = arith.constant dense<0.000000e+00> : vector<8x48xf32>
    %24 = tpu.matmul %21, %23, %cst_18 {dimension_numbers = #tpu.dot_dimension_numbers<[1], [0], [0], [1], [0, 0, 1, 1], [], []>} : vector<8x96xbf16>, vector<96x48xbf16>, vector<8x48xf32> -> vector<8x48xf32>
    %25 = vector.extract_strided_slice %0 {offsets = [0, 352], sizes = [8, 96], strides = [1, 1]} : vector<8x1024xbf16> to vector<8x96xbf16>
    %c6 = arith.constant 6 : index
    %c0_19 = arith.constant 0 : index
    %c0_20 = arith.constant 0 : index
    %26 = vector.load %arg2[%c6, %c0_19, %c0_20] : memref<16x96x48xbf16, #tpu.memory_space<vmem>>, vector<1x96x48xbf16>
    %27 = vector.shape_cast %26 : vector<1x96x48xbf16> to vector<96x48xbf16>
    %cst_21 = arith.constant dense<0.000000e+00> : vector<8x48xf32>
    %28 = tpu.matmul %25, %27, %cst_21 {dimension_numbers = #tpu.dot_dimension_numbers<[1], [0], [0], [1], [0, 0, 1, 1], [], []>} : vector<8x96xbf16>, vector<96x48xbf16>, vector<8x48xf32> -> vector<8x48xf32>
    %29 = vector.extract_strided_slice %0 {offsets = [0, 416], sizes = [8, 96], strides = [1, 1]} : vector<8x1024xbf16> to vector<8x96xbf16>
    %c7 = arith.constant 7 : index
    %c0_22 = arith.constant 0 : index
    %c0_23 = arith.constant 0 : index
    %30 = vector.load %arg2[%c7, %c0_22, %c0_23] : memref<16x96x48xbf16, #tpu.memory_space<vmem>>, vector<1x96x48xbf16>
    %31 = vector.shape_cast %30 : vector<1x96x48xbf16> to vector<96x48xbf16>
    %cst_24 = arith.constant dense<0.000000e+00> : vector<8x48xf32>
    %32 = tpu.matmul %29, %31, %cst_24 {dimension_numbers = #tpu.dot_dimension_numbers<[1], [0], [0], [1], [0, 0, 1, 1], [], []>} : vector<8x96xbf16>, vector<96x48xbf16>, vector<8x48xf32> -> vector<8x48xf32>
    %33 = vector.extract_strided_slice %0 {offsets = [0, 480], sizes = [8, 96], strides = [1, 1]} : vector<8x1024xbf16> to vector<8x96xbf16>
    %c8 = arith.constant 8 : index
    %c0_25 = arith.constant 0 : index
    %c0_26 = arith.constant 0 : index
    %34 = vector.load %arg2[%c8, %c0_25, %c0_26] : memref<16x96x48xbf16, #tpu.memory_space<vmem>>, vector<1x96x48xbf16>
    %35 = vector.shape_cast %34 : vector<1x96x48xbf16> to vector<96x48xbf16>
    %cst_27 = arith.constant dense<0.000000e+00> : vector<8x48xf32>
    %36 = tpu.matmul %33, %35, %cst_27 {dimension_numbers = #tpu.dot_dimension_numbers<[1], [0], [0], [1], [0, 0, 1, 1], [], []>} : vector<8x96xbf16>, vector<96x48xbf16>, vector<8x48xf32> -> vector<8x48xf32>
    %37 = vector.extract_strided_slice %0 {offsets = [0, 544], sizes = [8, 96], strides = [1, 1]} : vector<8x1024xbf16> to vector<8x96xbf16>
    %c9 = arith.constant 9 : index
    %c0_28 = arith.constant 0 : index
    %c0_29 = arith.constant 0 : index
    %38 = vector.load %arg2[%c9, %c0_28, %c0_29] : memref<16x96x48xbf16, #tpu.memory_space<vmem>>, vector<1x96x48xbf16>
    %39 = vector.shape_cast %38 : vector<1x96x48xbf16> to vector<96x48xbf16>
    %cst_30 = arith.constant dense<0.000000e+00> : vector<8x48xf32>
    %40 = tpu.matmul %37, %39, %cst_30 {dimension_numbers = #tpu.dot_dimension_numbers<[1], [0], [0], [1], [0, 0, 1, 1], [], []>} : vector<8x96xbf16>, vector<96x48xbf16>, vector<8x48xf32> -> vector<8x48xf32>
    %41 = vector.extract_strided_slice %0 {offsets = [0, 608], sizes = [8, 96], strides = [1, 1]} : vector<8x1024xbf16> to vector<8x96xbf16>
    %c10 = arith.constant 10 : index
    %c0_31 = arith.constant 0 : index
    %c0_32 = arith.constant 0 : index
    %42 = vector.load %arg2[%c10, %c0_31, %c0_32] : memref<16x96x48xbf16, #tpu.memory_space<vmem>>, vector<1x96x48xbf16>
    %43 = vector.shape_cast %42 : vector<1x96x48xbf16> to vector<96x48xbf16>
    %cst_33 = arith.constant dense<0.000000e+00> : vector<8x48xf32>
    %44 = tpu.matmul %41, %43, %cst_33 {dimension_numbers = #tpu.dot_dimension_numbers<[1], [0], [0], [1], [0, 0, 1, 1], [], []>} : vector<8x96xbf16>, vector<96x48xbf16>, vector<8x48xf32> -> vector<8x48xf32>
    %45 = vector.extract_strided_slice %0 {offsets = [0, 672], sizes = [8, 96], strides = [1, 1]} : vector<8x1024xbf16> to vector<8x96xbf16>
    %c11 = arith.constant 11 : index
    %c0_34 = arith.constant 0 : index
    %c0_35 = arith.constant 0 : index
    %46 = vector.load %arg2[%c11, %c0_34, %c0_35] : memref<16x96x48xbf16, #tpu.memory_space<vmem>>, vector<1x96x48xbf16>
    %47 = vector.shape_cast %46 : vector<1x96x48xbf16> to vector<96x48xbf16>
    %cst_36 = arith.constant dense<0.000000e+00> : vector<8x48xf32>
    %48 = tpu.matmul %45, %47, %cst_36 {dimension_numbers = #tpu.dot_dimension_numbers<[1], [0], [0], [1], [0, 0, 1, 1], [], []>} : vector<8x96xbf16>, vector<96x48xbf16>, vector<8x48xf32> -> vector<8x48xf32>
    %49 = vector.extract_strided_slice %0 {offsets = [0, 736], sizes = [8, 96], strides = [1, 1]} : vector<8x1024xbf16> to vector<8x96xbf16>
    %c12 = arith.constant 12 : index
    %c0_37 = arith.constant 0 : index
    %c0_38 = arith.constant 0 : index
    %50 = vector.load %arg2[%c12, %c0_37, %c0_38] : memref<16x96x48xbf16, #tpu.memory_space<vmem>>, vector<1x96x48xbf16>
    %51 = vector.shape_cast %50 : vector<1x96x48xbf16> to vector<96x48xbf16>
    %cst_39 = arith.constant dense<0.000000e+00> : vector<8x48xf32>
    %52 = tpu.matmul %49, %51, %cst_39 {dimension_numbers = #tpu.dot_dimension_numbers<[1], [0], [0], [1], [0, 0, 1, 1], [], []>} : vector<8x96xbf16>, vector<96x48xbf16>, vector<8x48xf32> -> vector<8x48xf32>
    %53 = vector.extract_strided_slice %0 {offsets = [0, 800], sizes = [8, 96], strides = [1, 1]} : vector<8x1024xbf16> to vector<8x96xbf16>
    %c13 = arith.constant 13 : index
    %c0_40 = arith.constant 0 : index
    %c0_41 = arith.constant 0 : index
    %54 = vector.load %arg2[%c13, %c0_40, %c0_41] : memref<16x96x48xbf16, #tpu.memory_space<vmem>>, vector<1x96x48xbf16>
    %55 = vector.shape_cast %54 : vector<1x96x48xbf16> to vector<96x48xbf16>
    %cst_42 = arith.constant dense<0.000000e+00> : vector<8x48xf32>
    %56 = tpu.matmul %53, %55, %cst_42 {dimension_numbers = #tpu.dot_dimension_numbers<[1], [0], [0], [1], [0, 0, 1, 1], [], []>} : vector<8x96xbf16>, vector<96x48xbf16>, vector<8x48xf32> -> vector<8x48xf32>
    %57 = vector.extract_strided_slice %0 {offsets = [0, 864], sizes = [8, 96], strides = [1, 1]} : vector<8x1024xbf16> to vector<8x96xbf16>
    %c14 = arith.constant 14 : index
    %c0_43 = arith.constant 0 : index
    %c0_44 = arith.constant 0 : index
    %58 = vector.load %arg2[%c14, %c0_43, %c0_44] : memref<16x96x48xbf16, #tpu.memory_space<vmem>>, vector<1x96x48xbf16>
    %59 = vector.shape_cast %58 : vector<1x96x48xbf16> to vector<96x48xbf16>
    %cst_45 = arith.constant dense<0.000000e+00> : vector<8x48xf32>
    %60 = tpu.matmul %57, %59, %cst_45 {dimension_numbers = #tpu.dot_dimension_numbers<[1], [0], [0], [1], [0, 0, 1, 1], [], []>} : vector<8x96xbf16>, vector<96x48xbf16>, vector<8x48xf32> -> vector<8x48xf32>
    %61 = vector.extract_strided_slice %0 {offsets = [0, 928], sizes = [8, 96], strides = [1, 1]} : vector<8x1024xbf16> to vector<8x96xbf16>
    %c15 = arith.constant 15 : index
    %c0_46 = arith.constant 0 : index
    %c0_47 = arith.constant 0 : index
    %62 = vector.load %arg2[%c15, %c0_46, %c0_47] : memref<16x96x48xbf16, #tpu.memory_space<vmem>>, vector<1x96x48xbf16>
    %63 = vector.shape_cast %62 : vector<1x96x48xbf16> to vector<96x48xbf16>
    %cst_48 = arith.constant dense<0.000000e+00> : vector<8x48xf32>
    %64 = tpu.matmul %61, %63, %cst_48 {dimension_numbers = #tpu.dot_dimension_numbers<[1], [0], [0], [1], [0, 0, 1, 1], [], []>} : vector<8x96xbf16>, vector<96x48xbf16>, vector<8x48xf32> -> vector<8x48xf32>
    %65 = tpu.concatenate %4, %8, %12, %16, %20, %24, %28, %32, %36, %40, %44, %48, %52, %56, %60, %64 in 1 : vector<8x48xf32>, vector<8x48xf32>, vector<8x48xf32>, vector<8x48xf32>, vector<8x48xf32>, vector<8x48xf32>, vector<8x48xf32>, vector<8x48xf32>, vector<8x48xf32>, vector<8x48xf32>, vector<8x48xf32>, vector<8x48xf32>, vector<8x48xf32>, vector<8x48xf32>, vector<8x48xf32>, vector<8x48xf32> -> vector<8x768xf32>
    %c0_49 = arith.constant 0 : index
    %c0_50 = arith.constant 0 : index
    %66 = vector.load %arg3[%c0_49, %c0_50] : memref<1x768xf32, #tpu.memory_space<vmem>>, vector<1x768xf32>
    %67 = vector.broadcast %66 : vector<1x768xf32> to vector<8x768xf32>
    %68 = arith.addf %65, %67 : vector<8x768xf32>
    %cst_51 = arith.constant 0.00999999977 : f32
    %69 = vector.broadcast %cst_51 : f32 to vector<8x768xf32>
    %70 = arith.mulf %69, %68 : vector<8x768xf32>
    %71 = arith.maximumf %68, %70 : vector<8x768xf32>
    %72 = arith.truncf %71 : vector<8x768xf32> to vector<8x768xbf16>
    %73 = vector.extract_strided_slice %72 {offsets = [0, 0], sizes = [8, 144], strides = [1, 1]} : vector<8x768xbf16> to vector<8x144xbf16>
    %c0_52 = arith.constant 0 : index
    %c0_53 = arith.constant 0 : index
    %c0_54 = arith.constant 0 : index
    %74 = vector.load %arg4[%c0_52, %c0_53, %c0_54] : memref<8x144x72xbf16, #tpu.memory_space<vmem>>, vector<1x144x72xbf16>
    %75 = vector.shape_cast %74 : vector<1x144x72xbf16> to vector<144x72xbf16>
    %cst_55 = arith.constant dense<0.000000e+00> : vector<8x72xf32>
    %76 = tpu.matmul %73, %75, %cst_55 {dimension_numbers = #tpu.dot_dimension_numbers<[1], [0], [0], [1], [0, 0, 1, 1], [], []>} : vector<8x144xbf16>, vector<144x72xbf16>, vector<8x72xf32> -> vector<8x72xf32>
    %77 = vector.extract_strided_slice %72 {offsets = [0, 48], sizes = [8, 144], strides = [1, 1]} : vector<8x768xbf16> to vector<8x144xbf16>
    %c1_56 = arith.constant 1 : index
    %c0_57 = arith.constant 0 : index
    %c0_58 = arith.constant 0 : index
    %78 = vector.load %arg4[%c1_56, %c0_57, %c0_58] : memref<8x144x72xbf16, #tpu.memory_space<vmem>>, vector<1x144x72xbf16>
    %79 = vector.shape_cast %78 : vector<1x144x72xbf16> to vector<144x72xbf16>
    %cst_59 = arith.constant dense<0.000000e+00> : vector<8x72xf32>
    %80 = tpu.matmul %77, %79, %cst_59 {dimension_numbers = #tpu.dot_dimension_numbers<[1], [0], [0], [1], [0, 0, 1, 1], [], []>} : vector<8x144xbf16>, vector<144x72xbf16>, vector<8x72xf32> -> vector<8x72xf32>
    %81 = vector.extract_strided_slice %72 {offsets = [0, 144], sizes = [8, 144], strides = [1, 1]} : vector<8x768xbf16> to vector<8x144xbf16>
    %c2_60 = arith.constant 2 : index
    %c0_61 = arith.constant 0 : index
    %c0_62 = arith.constant 0 : index
    %82 = vector.load %arg4[%c2_60, %c0_61, %c0_62] : memref<8x144x72xbf16, #tpu.memory_space<vmem>>, vector<1x144x72xbf16>
    %83 = vector.shape_cast %82 : vector<1x144x72xbf16> to vector<144x72xbf16>
    %cst_63 = arith.constant dense<0.000000e+00> : vector<8x72xf32>
    %84 = tpu.matmul %81, %83, %cst_63 {dimension_numbers = #tpu.dot_dimension_numbers<[1], [0], [0], [1], [0, 0, 1, 1], [], []>} : vector<8x144xbf16>, vector<144x72xbf16>, vector<8x72xf32> -> vector<8x72xf32>
    %85 = vector.extract_strided_slice %72 {offsets = [0, 240], sizes = [8, 144], strides = [1, 1]} : vector<8x768xbf16> to vector<8x144xbf16>
    %c3_64 = arith.constant 3 : index
    %c0_65 = arith.constant 0 : index
    %c0_66 = arith.constant 0 : index
    %86 = vector.load %arg4[%c3_64, %c0_65, %c0_66] : memref<8x144x72xbf16, #tpu.memory_space<vmem>>, vector<1x144x72xbf16>
    %87 = vector.shape_cast %86 : vector<1x144x72xbf16> to vector<144x72xbf16>
    %cst_67 = arith.constant dense<0.000000e+00> : vector<8x72xf32>
    %88 = tpu.matmul %85, %87, %cst_67 {dimension_numbers = #tpu.dot_dimension_numbers<[1], [0], [0], [1], [0, 0, 1, 1], [], []>} : vector<8x144xbf16>, vector<144x72xbf16>, vector<8x72xf32> -> vector<8x72xf32>
    %89 = vector.extract_strided_slice %72 {offsets = [0, 336], sizes = [8, 144], strides = [1, 1]} : vector<8x768xbf16> to vector<8x144xbf16>
    %c4_68 = arith.constant 4 : index
    %c0_69 = arith.constant 0 : index
    %c0_70 = arith.constant 0 : index
    %90 = vector.load %arg4[%c4_68, %c0_69, %c0_70] : memref<8x144x72xbf16, #tpu.memory_space<vmem>>, vector<1x144x72xbf16>
    %91 = vector.shape_cast %90 : vector<1x144x72xbf16> to vector<144x72xbf16>
    %cst_71 = arith.constant dense<0.000000e+00> : vector<8x72xf32>
    %92 = tpu.matmul %89, %91, %cst_71 {dimension_numbers = #tpu.dot_dimension_numbers<[1], [0], [0], [1], [0, 0, 1, 1], [], []>} : vector<8x144xbf16>, vector<144x72xbf16>, vector<8x72xf32> -> vector<8x72xf32>
    %93 = vector.extract_strided_slice %72 {offsets = [0, 432], sizes = [8, 144], strides = [1, 1]} : vector<8x768xbf16> to vector<8x144xbf16>
    %c5_72 = arith.constant 5 : index
    %c0_73 = arith.constant 0 : index
    %c0_74 = arith.constant 0 : index
    %94 = vector.load %arg4[%c5_72, %c0_73, %c0_74] : memref<8x144x72xbf16, #tpu.memory_space<vmem>>, vector<1x144x72xbf16>
    %95 = vector.shape_cast %94 : vector<1x144x72xbf16> to vector<144x72xbf16>
    %cst_75 = arith.constant dense<0.000000e+00> : vector<8x72xf32>
    %96 = tpu.matmul %93, %95, %cst_75 {dimension_numbers = #tpu.dot_dimension_numbers<[1], [0], [0], [1], [0, 0, 1, 1], [], []>} : vector<8x144xbf16>, vector<144x72xbf16>, vector<8x72xf32> -> vector<8x72xf32>
    %97 = vector.extract_strided_slice %72 {offsets = [0, 528], sizes = [8, 144], strides = [1, 1]} : vector<8x768xbf16> to vector<8x144xbf16>
    %c6_76 = arith.constant 6 : index
    %c0_77 = arith.constant 0 : index
    %c0_78 = arith.constant 0 : index
    %98 = vector.load %arg4[%c6_76, %c0_77, %c0_78] : memref<8x144x72xbf16, #tpu.memory_space<vmem>>, vector<1x144x72xbf16>
    %99 = vector.shape_cast %98 : vector<1x144x72xbf16> to vector<144x72xbf16>
    %cst_79 = arith.constant dense<0.000000e+00> : vector<8x72xf32>
    %100 = tpu.matmul %97, %99, %cst_79 {dimension_numbers = #tpu.dot_dimension_numbers<[1], [0], [0], [1], [0, 0, 1, 1], [], []>} : vector<8x144xbf16>, vector<144x72xbf16>, vector<8x72xf32> -> vector<8x72xf32>
    %101 = vector.extract_strided_slice %72 {offsets = [0, 624], sizes = [8, 144], strides = [1, 1]} : vector<8x768xbf16> to vector<8x144xbf16>
    %c7_80 = arith.constant 7 : index
    %c0_81 = arith.constant 0 : index
    %c0_82 = arith.constant 0 : index
    %102 = vector.load %arg4[%c7_80, %c0_81, %c0_82] : memref<8x144x72xbf16, #tpu.memory_space<vmem>>, vector<1x144x72xbf16>
    %103 = vector.shape_cast %102 : vector<1x144x72xbf16> to vector<144x72xbf16>
    %cst_83 = arith.constant dense<0.000000e+00> : vector<8x72xf32>
    %104 = tpu.matmul %101, %103, %cst_83 {dimension_numbers = #tpu.dot_dimension_numbers<[1], [0], [0], [1], [0, 0, 1, 1], [], []>} : vector<8x144xbf16>, vector<144x72xbf16>, vector<8x72xf32> -> vector<8x72xf32>
    %105 = tpu.concatenate %76, %80, %84, %88, %92, %96, %100, %104 in 1 : vector<8x72xf32>, vector<8x72xf32>, vector<8x72xf32>, vector<8x72xf32>, vector<8x72xf32>, vector<8x72xf32>, vector<8x72xf32>, vector<8x72xf32> -> vector<8x576xf32>
    %c0_84 = arith.constant 0 : index
    %c0_85 = arith.constant 0 : index
    %106 = vector.load %arg5[%c0_84, %c0_85] : memref<1x576xf32, #tpu.memory_space<vmem>>, vector<1x576xf32>
    %107 = vector.broadcast %106 : vector<1x576xf32> to vector<8x576xf32>
    %108 = arith.addf %105, %107 : vector<8x576xf32>
    %cst_86 = arith.constant 0.00999999977 : f32
    %109 = vector.broadcast %cst_86 : f32 to vector<8x576xf32>
    %110 = arith.mulf %109, %108 : vector<8x576xf32>
    %111 = arith.maximumf %108, %110 : vector<8x576xf32>
    %112 = arith.truncf %111 : vector<8x576xf32> to vector<8x576xbf16>
    %113 = vector.extract_strided_slice %112 {offsets = [0, 0], sizes = [8, 216], strides = [1, 1]} : vector<8x576xbf16> to vector<8x216xbf16>
    %c0_87 = arith.constant 0 : index
    %c0_88 = arith.constant 0 : index
    %c0_89 = arith.constant 0 : index
    %114 = vector.load %arg6[%c0_87, %c0_88, %c0_89] : memref<4x216x72xbf16, #tpu.memory_space<vmem>>, vector<1x216x72xbf16>
    %115 = vector.shape_cast %114 : vector<1x216x72xbf16> to vector<216x72xbf16>
    %cst_90 = arith.constant dense<0.000000e+00> : vector<8x72xf32>
    %116 = tpu.matmul %113, %115, %cst_90 {dimension_numbers = #tpu.dot_dimension_numbers<[1], [0], [0], [1], [0, 0, 1, 1], [], []>} : vector<8x216xbf16>, vector<216x72xbf16>, vector<8x72xf32> -> vector<8x72xf32>
    %117 = vector.extract_strided_slice %112 {offsets = [0, 72], sizes = [8, 216], strides = [1, 1]} : vector<8x576xbf16> to vector<8x216xbf16>
    %c1_91 = arith.constant 1 : index
    %c0_92 = arith.constant 0 : index
    %c0_93 = arith.constant 0 : index
    %118 = vector.load %arg6[%c1_91, %c0_92, %c0_93] : memref<4x216x72xbf16, #tpu.memory_space<vmem>>, vector<1x216x72xbf16>
    %119 = vector.shape_cast %118 : vector<1x216x72xbf16> to vector<216x72xbf16>
    %cst_94 = arith.constant dense<0.000000e+00> : vector<8x72xf32>
    %120 = tpu.matmul %117, %119, %cst_94 {dimension_numbers = #tpu.dot_dimension_numbers<[1], [0], [0], [1], [0, 0, 1, 1], [], []>} : vector<8x216xbf16>, vector<216x72xbf16>, vector<8x72xf32> -> vector<8x72xf32>
    %121 = vector.extract_strided_slice %112 {offsets = [0, 216], sizes = [8, 216], strides = [1, 1]} : vector<8x576xbf16> to vector<8x216xbf16>
    %c2_95 = arith.constant 2 : index
    %c0_96 = arith.constant 0 : index
    %c0_97 = arith.constant 0 : index
    %122 = vector.load %arg6[%c2_95, %c0_96, %c0_97] : memref<4x216x72xbf16, #tpu.memory_space<vmem>>, vector<1x216x72xbf16>
    %123 = vector.shape_cast %122 : vector<1x216x72xbf16> to vector<216x72xbf16>
    %cst_98 = arith.constant dense<0.000000e+00> : vector<8x72xf32>
    %124 = tpu.matmul %121, %123, %cst_98 {dimension_numbers = #tpu.dot_dimension_numbers<[1], [0], [0], [1], [0, 0, 1, 1], [], []>} : vector<8x216xbf16>, vector<216x72xbf16>, vector<8x72xf32> -> vector<8x72xf32>
    %125 = vector.extract_strided_slice %112 {offsets = [0, 360], sizes = [8, 216], strides = [1, 1]} : vector<8x576xbf16> to vector<8x216xbf16>
    %c3_99 = arith.constant 3 : index
    %c0_100 = arith.constant 0 : index
    %c0_101 = arith.constant 0 : index
    %126 = vector.load %arg6[%c3_99, %c0_100, %c0_101] : memref<4x216x72xbf16, #tpu.memory_space<vmem>>, vector<1x216x72xbf16>
    %127 = vector.shape_cast %126 : vector<1x216x72xbf16> to vector<216x72xbf16>
    %cst_102 = arith.constant dense<0.000000e+00> : vector<8x72xf32>
    %128 = tpu.matmul %125, %127, %cst_102 {dimension_numbers = #tpu.dot_dimension_numbers<[1], [0], [0], [1], [0, 0, 1, 1], [], []>} : vector<8x216xbf16>, vector<216x72xbf16>, vector<8x72xf32> -> vector<8x72xf32>
    %129 = tpu.concatenate %116, %120, %124, %128 in 1 : vector<8x72xf32>, vector<8x72xf32>, vector<8x72xf32>, vector<8x72xf32> -> vector<8x288xf32>
    %c0_103 = arith.constant 0 : index
    %c0_104 = arith.constant 0 : index
    %130 = vector.load %arg7[%c0_103, %c0_104] : memref<1x288xf32, #tpu.memory_space<vmem>>, vector<1x288xf32>
    %131 = vector.broadcast %130 : vector<1x288xf32> to vector<8x288xf32>
    %132 = arith.addf %129, %131 : vector<8x288xf32>
    %cst_105 = arith.constant 0.00999999977 : f32
    %133 = vector.broadcast %cst_105 : f32 to vector<8x288xf32>
    %134 = arith.mulf %133, %132 : vector<8x288xf32>
    %135 = arith.maximumf %132, %134 : vector<8x288xf32>
    %136 = arith.truncf %135 : vector<8x288xf32> to vector<8x288xbf16>
    %c0_106 = arith.constant 0 : index
    %c0_107 = arith.constant 0 : index
    %137 = vector.load %arg8[%c0_106, %c0_107] : memref<288x128xbf16, #tpu.memory_space<vmem>>, vector<288x128xbf16>
    %cst_108 = arith.constant dense<0.000000e+00> : vector<8x128xf32>
    %138 = tpu.matmul %136, %137, %cst_108 {dimension_numbers = #tpu.dot_dimension_numbers<[1], [0], [0], [1], [0, 0, 1, 1], [], []>} : vector<8x288xbf16>, vector<288x128xbf16>, vector<8x128xf32> -> vector<8x128xf32>
    %c0_109 = arith.constant 0 : index
    %c0_110 = arith.constant 0 : index
    %139 = vector.load %arg9[%c0_109, %c0_110] : memref<1x128xf32, #tpu.memory_space<vmem>>, vector<1x128xf32>
    %140 = vector.broadcast %139 : vector<1x128xf32> to vector<8x128xf32>
    %141 = arith.addf %138, %140 : vector<8x128xf32>
    %c0_111 = arith.constant 0 : index
    %c0_112 = arith.constant 0 : index
    %142 = vector.load %arg10[%c0_111, %c0_112] : memref<8x128xf32, #tpu.memory_space<vmem>>, vector<8x128xf32>
    tpu.vector_store %arg10[%c0_111, %c0_112], %141 {strides = array<i32>} : memref<8x128xf32, #tpu.memory_space<vmem>>, vector<8x128xf32>,
    return
  }
  func.func @transform_0(%arg0: i32) -> (i32, i32) {
    %c0_i32 = arith.constant 0 : i32
    %c0_i32_0 = arith.constant 0 : i32
    return %arg0, %c0_i32 : i32, i32
  }
  func.func @transform_1(%arg0: i32) -> (i32, i32, i32) {
    %c0_i32 = arith.constant 0 : i32
    %c0_i32_0 = arith.constant 0 : i32
    %c0_i32_1 = arith.constant 0 : i32
    %c0_i32_2 = arith.constant 0 : i32
    return %c0_i32, %c0_i32_0, %c0_i32_1 : i32, i32, i32
  }
  func.func @transform_2(%arg0: i32) -> (i32, i32) {
    %c0_i32 = arith.constant 0 : i32
    %c0_i32_0 = arith.constant 0 : i32
    %c0_i32_1 = arith.constant 0 : i32
    return %c0_i32, %c0_i32_0 : i32, i32
  }
  func.func @transform_3(%arg0: i32) -> (i32, i32, i32) {
    %c0_i32 = arith.constant 0 : i32
    %c0_i32_0 = arith.constant 0 : i32
    %c0_i32_1 = arith.constant 0 : i32
    %c0_i32_2 = arith.constant 0 : i32
    return %c0_i32, %c0_i32_0, %c0_i32_1 : i32, i32, i32
  }
  func.func @transform_4(%arg0: i32) -> (i32, i32) {
    %c0_i32 = arith.constant 0 : i32
    %c0_i32_0 = arith.constant 0 : i32
    %c0_i32_1 = arith.constant 0 : i32
    return %c0_i32, %c0_i32_0 : i32, i32
  }
  func.func @transform_5(%arg0: i32) -> (i32, i32, i32) {
    %c0_i32 = arith.constant 0 : i32
    %c0_i32_0 = arith.constant 0 : i32
    %c0_i32_1 = arith.constant 0 : i32
    %c0_i32_2 = arith.constant 0 : i32
    return %c0_i32, %c0_i32_0, %c0_i32_1 : i32, i32, i32
  }
  func.func @transform_6(%arg0: i32) -> (i32, i32) {
    %c0_i32 = arith.constant 0 : i32
    %c0_i32_0 = arith.constant 0 : i32
    %c0_i32_1 = arith.constant 0 : i32
    return %c0_i32, %c0_i32_0 : i32, i32
  }
  func.func @transform_7(%arg0: i32) -> (i32, i32) {
    %c0_i32 = arith.constant 0 : i32
    %c0_i32_0 = arith.constant 0 : i32
    %c0_i32_1 = arith.constant 0 : i32
    return %c0_i32, %c0_i32_0 : i32, i32
  }
  func.func @transform_8(%arg0: i32) -> (i32, i32) {
    %c0_i32 = arith.constant 0 : i32
    %c0_i32_0 = arith.constant 0 : i32
    %c0_i32_1 = arith.constant 0 : i32
    return %c0_i32, %c0_i32_0 : i32, i32
  }
  func.func @transform_9(%arg0: i32) -> (i32, i32) {
    %c0_i32 = arith.constant 0 : i32
    %c0_i32_0 = arith.constant 0 : i32
    return %arg0, %c0_i32 : i32, i32
  }
}

</mosaic_0001>

<bundles_post_ra>
// kernel: auto_edcoder_forward.1
= control target key start
LH: loop header
LB: loop body
LE: loop exit
PB: predicated region body
PF: predicated region fallthrough
CT: control target
= control target key end

     0   :  { %v5039_v1 = vmov 0.0   ;;  %vm5040_vm0 = vmmov 0   ;;  %s5041_s15 = smov 96   ;;  %s5042_s16 = smov 32   ;;  %vm85_vm1 = vcmask 785408   ;;  %vm245_vm2 = vcmask 261120   ;;  %s6322_s0 = inlined_call_operand.vmem [shape: bf16[8,1024], index: 0, kind: input, shape index: {}]   ;;  %s6323_s1 = inlined_call_operand.vmem [shape: bf16[16,96,48], index: 1, kind: input, shape index: {}]   ;;  %s6324_s3 = inlined_call_operand.vmem [shape: bf16[8,144,72], index: 3, kind: input, shape index: {}]   ;;  %s6325_s2 = inlined_call_operand.vmem [shape: f32[1,768], index: 2, kind: input, shape index: {}]   ;;  %s6326_s5 = inlined_call_operand.vmem [shape: bf16[4,216,72], index: 5, kind: input, shape index: {}]   ;;  %s6327_s4 = inlined_call_operand.vmem [shape: f32[1,576], index: 4, kind: input, shape index: {}]   ;;  %s6328_s7 = inlined_call_operand.vmem [shape: bf16[288,128], index: 7, kind: input, shape index: {}]   ;;  %s6329_s6 = inlined_call_operand.vmem [shape: f32[1,288], index: 6, kind: input, shape index: {}]   ;;  %s6330_s8 = inlined_call_operand.vmem [shape: f32[1,128], index: 8, kind: input, shape index: {}]   ;;  %s6331_s9 = inlined_call_operand.vmem [shape: f32[8,128], index: 9, kind: output, shape index: {}]  }
   0x1   :  { %v5109_v0 = vld [vmem:[%s6322_s0] sm:$0xff]  ;;  %4508 = vmatprep.subr.bf16.mxu0 %v5039_v1  ;;  %4524 = vmatprep.subr.bf16.mxu1 %v5039_v1  ;;  %v34_v5 = vld [vmem:[%s6322_s0 + $0x8] sm:$0xff]  ;;  %v4799_v8 = vld [vmem:[%s6323_s1 + $0x30] sm:$0xff]   ;;  %s5043_s11 = smov 48   ;;  %s5045_s22 = smov 16   ;;  %vm1625_vm3 = vcmask 392192  }
   0x2   :  { %v3723_v2 = vcombine.low %v5109_v0, %v5109_v0  ;;  %v3743_v3 = vcombine.high %v5109_v0, %v5109_v0  ;;  %v4793_v4 = vld [vmem:[%s6323_s1] sm:$0xff]   ;;  %4520 = vmatprep.mubr.msk.bf16.mxu0 %vm5040_vm0, %v5039_v1  ;;  %4536 = vmatprep.mubr.msk.bf16.mxu1 %vm5040_vm0, %v5039_v1  ;;  %v4794_v6 = vld [vmem:[%s6323_s1 + $0x8] sm:$0xff]   ;;  %v3782_v7 = vcombine.low %v34_v5, %v34_v5  ;;  %v4796_v9 = vld [vmem:[%s6323_s1 + $0x10] sm:$0xff]   ;;  %s5046_s25 = smov 64   ;;  %s5048_s12 = smov 80   ;;  %vm1628_vm4 = vcmask 130048  }
   0x3   :  { %4509 = vmatpush3.bf16.msra.mxu0 %v4793_v4  ;;  %4525 = vmatpush3.bf16.msra.mxu1 %v4799_v8  ;;  %v4801_v10 = vld [vmem:[%s6323_s1 + $0x38] sm:$0xff]   ;;  %v3821_v11 = vcombine.high %v34_v5, %v34_v5  ;;  %v35_v12 = vld [vmem:[%s6322_s0 + $0x10] sm:$0xff]  ;;  %v4803_v14 = vld [vmem:[%s6323_s1 + $0x40] sm:$0xff]   ;;  %vm1630_vm5 = vcmask 523264   ;;  %vm1632_vm6 = vcmask 916480   ;;  %vm1636_vm7 = vcmask 654336  }
   0x4   :  { %145 = vrot.lane.b32.xlu0 %v3723_v2, %s5041_s15  ;;  %243 = vrot.lane.b32.xlu1 %v3743_v3, %s5042_s16  ;;  %v4797_v13 = vld [vmem:[%s6323_s1 + $0x18] sm:$0xff]   ;;  %v3860_v15 = vcombine.low %v35_v12, %v35_v12  ;;  %v4798_v16 = vld [vmem:[%s6323_s1 + $0x20] sm:$0xff]   ;;  %v3899_v18 = vcombine.high %v35_v12, %v35_v12  ;;  %vm2877_vm8 = vcmask 1043456   ;;  %s5050_s26 = smov 88   ;;  %s5051_s27 = smov 104   ;;  %vm2708_vm9 = vcmask 588800  }
   0x5   :  { %4510 = vmatprep.subr.bf16.mxu0 %v5039_v1  ;;  %4526 = vmatprep.subr.bf16.mxu1 %v5039_v1  ;;  %v4806_v17 = vld [vmem:[%s6323_s1 + $0x48] sm:$0xff]   ;;  %v4808_v20 = vld [vmem:[%s6323_s1 + $0x50] sm:$0xff]   ;;  %v4802_v21 = vld [vmem:[%s6323_s1 + $0x60] sm:$0xff]   ;;  %vm2711_vm10 = vcmask 719872   ;;  %vm2714_vm11 = vcmask 850944   ;;  %s5054_s14 = smov 40  }
   0x6   :  { %v4800_v19 = vld [vmem:[%s6323_s1 + $0x28] sm:$0xff]   ;;  %v4810_v22 = vld [vmem:[%s6323_s1 + $0x58] sm:$0xff]   ;;  %v4807_v24 = vld [vmem:[%s6323_s1 + $0x70] sm:$0xff]   ;;  %vm2717_vm12 = vcmask 982016   ;;  %s5055_s21 = smov 24   ;;  %vm2958_vm13 = vcmask 457728  }
   0x7   :  { %4511 = vmatpush3.bf16.msra.mxu0 %v4794_v6  ;;  %4527 = vmatpush3.bf16.msra.mxu1 %v4801_v10  ;;  %v4805_v23 = vld [vmem:[%s6323_s1 + $0x68] sm:$0xff]   ;;  %v4809_v25 = vld [vmem:[%s6323_s1 + $0x78] sm:$0xff]   ;;  %v4811_v28 = vld [vmem:[%s6323_s1 + $0x80] sm:$0xff]   ;;  %vm3124_vm14 = vcmask 326656   ;;  %vm3290_vm15 = vcmask 195584  }
   0x8   :  { %241 = vrot.lane.b32.xlu0 %v3723_v2, %s5042_s16  ;;  %339 = vrot.lane.b32.xlu1 %v3743_v3, %s5041_s15  ;;  %v36_v26 = vld [vmem:[%s6322_s0 + $0x18] sm:$0xff]  ;;  %v4813_v29 = vld [vmem:[%s6323_s1 + $0x88] sm:$0xff]  }
   0x9   :  { %4512 = vmatprep.subr.bf16.mxu0 %v5039_v1  ;;  %4528 = vmatprep.subr.bf16.mxu1 %v5039_v1  ;;  %v3938_v27 = vcombine.low %v36_v26, %v36_v26  ;;  %v3977_v30 = vcombine.high %v36_v26, %v36_v26  ;;  %v4812_v31 = vld [vmem:[%s6323_s1 + $0x90] sm:$0xff]   ;;  %v4814_v34 = vld [vmem:[%s6323_s1 + $0x98] sm:$0xff]   ;;  %v4815_v35 = vld [vmem:[%s6323_s1 + $0xc0] sm:$0xff]  }
   0xa   :  { %v4816_v38 = vld [vmem:[%s6323_s1 + $0xa0] sm:$0xff]   ;;  %v4817_v39 = vld [vmem:[%s6323_s1 + $0xc8] sm:$0xff]   ;;  %v4819_v41 = vld [vmem:[%s6323_s1 + $0xd0] sm:$0xff]  }
   0xb   :  { %4513 = vmatpush3.bf16.msra.mxu0 %v4796_v9  ;;  %4529 = vmatpush3.bf16.msra.mxu1 %v4803_v14  ;;  %v4818_v40 = vld [vmem:[%s6323_s1 + $0xa8] sm:$0xff]   ;;  %v4820_v42 = vld [vmem:[%s6323_s1 + $0xb0] sm:$0xff]   ;;  %v4821_v43 = vld [vmem:[%s6323_s1 + $0xd8] sm:$0xff]  }
   0xc   :  { %436 = vrot.lane.b32.xlu0 %v3782_v7, %s5042_s16  ;;  %531 = vrot.lane.b32.xlu1 %v3782_v7, %s5041_s15  ;;  %v4822_v44 = vld [vmem:[%s6323_s1 + $0xb8] sm:$0xff]   ;;  %v4823_v45 = vld [vmem:[%s6323_s1 + $0xe0] sm:$0xff]  }
   0xd   :  { %4514 = vmatprep.subr.bf16.mxu0 %v5039_v1  ;;  %4530 = vmatprep.subr.bf16.mxu1 %v5039_v1  ;;  %v4824_v47 = vld [vmem:[%s6323_s1 + $0xf0] sm:$0xff]   ;;  %v4825_v48 = vld [vmem:[%s6323_s1 + $0xe8] sm:$0xff]   ;;  %v4826_v50 = vld [vmem:[%s6323_s1 + $0xf8] sm:$0xff]  }
   0xe   :  { %v4827_v51 = vld [vmem:[%s6323_s1 + $0x120] sm:$0xff]   ;;  %v4830_v54 = vld [vmem:[%s6323_s1 + $0x128] sm:$0xff]   ;;  %v4832_v56 = vld [vmem:[%s6323_s1 + $0x130] sm:$0xff]  }
   0xf   :  { %4515 = vmatpush3.bf16.msra.mxu0 %v4797_v13  ;;  %4531 = vmatpush3.bf16.msra.mxu1 %v4806_v17  ;;  %v4828_v53 = vld [vmem:[%s6323_s1 + $0x100] sm:$0xff]   ;;  %v4831_v55 = vld [vmem:[%s6323_s1 + $0x108] sm:$0xff]   ;;  %v4833_v57 = vld [vmem:[%s6323_s1 + $0x110] sm:$0xff]  }
  0x10   :  { %627 = vrot.lane.b32.xlu0 %v3821_v11, %s5042_s16  ;;  %722 = vrot.lane.b32.xlu1 %v3821_v11, %s5041_s15  ;;  %v4834_v58 = vld [vmem:[%s6323_s1 + $0x138] sm:$0xff]   ;;  %v4836_v60 = vld [vmem:[%s6323_s1 + $0x140] sm:$0xff]  }
  0x11   :  { %4516 = vmatprep.subr.bf16.mxu0 %v5039_v1  ;;  %4532 = vmatprep.subr.bf16.mxu1 %v5039_v1  ;;  %v4835_v59 = vld [vmem:[%s6323_s1 + $0x118] sm:$0xff]   ;;  %v4837_v62 = vld [vmem:[%s6323_s1 + $0x150] sm:$0xff]   ;;  %v4838_v63 = vld [vmem:[%s6323_s1 + $0x148] sm:$0xff]  }
  0x12   :  { %v4839_v2 = vld [vmem:[%s6323_s1 + $0x158] sm:$0xff]   ;;  %v4840_v3 = vld [vmem:[%s6323_s1 + $0x180] sm:$0xff]   ;;  %v4843_v6 = vld [vmem:[%s6323_s1 + $0x188] sm:$0xff]  }
  0x13   :  { %4517 = vmatpush3.bf16.msra.mxu0 %v4798_v16  ;;  %4533 = vmatpush3.bf16.msra.mxu1 %v4808_v20  ;;  %v4842_v5 = vld [vmem:[%s6323_s1 + $0x160] sm:$0xff]   ;;  %v4844_v7 = vld [vmem:[%s6323_s1 + $0x168] sm:$0xff]   ;;  %v4845_v8 = vld [vmem:[%s6323_s1 + $0x190] sm:$0xff]  }
  0x14   :  { %819 = vrot.lane.b32.xlu0 %v3860_v15, %s5042_s16  ;;  %914 = vrot.lane.b32.xlu1 %v3860_v15, %s5041_s15  ;;  %v4846_v9 = vld [vmem:[%s6323_s1 + $0x170] sm:$0xff]   ;;  %v4847_v10 = vld [vmem:[%s6323_s1 + $0x198] sm:$0xff]  }
  0x15   :  { %4518 = vmatprep.subr.bf16.mxu0 %v5039_v1  ;;  %4534 = vmatprep.subr.bf16.mxu1 %v5039_v1  ;;  %v4848_v11 = vld [vmem:[%s6323_s1 + $0x178] sm:$0xff]   ;;  %v4849_v12 = vld [vmem:[%s6323_s1 + $0x1a0] sm:$0xff]   ;;  %v4850_v14 = vld [vmem:[%s6323_s1 + $0x1b0] sm:$0xff]  }
  0x16   :  { %v4851_v15 = vld [vmem:[%s6323_s1 + $0x1a8] sm:$0xff]   ;;  %v4852_v17 = vld [vmem:[%s6323_s1 + $0x1b8] sm:$0xff]   ;;  %v4854_v20 = vld [vmem:[%s6323_s1 + $0x1c0] sm:$0xff]  }
  0x17   :  { %4519 = vmatpush3.bf16.msra.mxu0 %v4800_v19  ;;  %4535 = vmatpush3.bf16.msra.mxu1 %v4810_v22  ;;  %v4853_v19 = vld [vmem:[%s6323_s1 + $0x1e0] sm:$0xff]   ;;  %v4856_v22 = vld [vmem:[%s6323_s1 + $0x1c8] sm:$0xff]   ;;  %v4860_v26 = vld [vmem:[%s6323_s1 + $0x1d8] sm:$0xff]  }
  0x18   :  { %1010 = vrot.lane.b32.xlu0 %v3899_v18, %s5042_s16  ;;  %1105 = vrot.lane.b32.xlu1 %v3899_v18, %s5041_s15 }
  0x19   :  { %4540 = vmatprep.subr.bf16.mxu0 %v5039_v1  ;;  %4556 = vmatprep.subr.bf16.mxu1 %v5039_v1 }
  0x1a   :  { %4521 = vmatmul.mubr.msk.bf16.vlgmr.msra.gmra.mrb[0].mxu0 %vm85_vm1, %v5109_v0 }
  0x1b   :  { %4541 = vmatpush3.bf16.msra.mxu0 %v4802_v21  ;;  %4552 = vmatprep.mubr.msk.bf16.mxu0 %vm5040_vm0, %v5039_v1  ;;  %v4855_v21 = vld [vmem:[%s6323_s1 + $0x1e8] sm:$0xff]  }
  0x1c   :  { %4542 = vmatprep.subr.bf16.mxu0 %v5039_v1  ;;  %1202 = vrot.lane.b32.xlu0 %v3938_v27, %s5042_s16 }
  0x1d   :  { %1297 = vrot.lane.b32.xlu1 %v3938_v27, %s5041_s15  ;;  %v4861_v27 = vld [vmem:[%s6323_s1 + $0x200] sm:$0xff]  }
  0x1f   :  { %4543 = vmatpush3.bf16.msra.mxu0 %v4805_v23  ;;  %v4857_v23 = vld [vmem:[%s6323_s1 + $0x1f0] sm:$0xff]  }
  0x20   :  { %4544 = vmatprep.subr.bf16.mxu0 %v5039_v1  ;;  %1393 = vrot.lane.b32.xlu0 %v3977_v30, %s5042_s16 }
  0x21   :  { %1488 = vrot.lane.b32.xlu1 %v3977_v30, %s5041_s15  ;;  %v4862_v30 = vld [vmem:[%s6323_s1 + $0x208] sm:$0xff]  }
  0x23   :  { %4545 = vmatpush3.bf16.msra.mxu0 %v4807_v24  ;;  %v4858_v24 = vld [vmem:[%s6323_s1 + $0x1d0] sm:$0xff]  }
  0x24   :  { %4546 = vmatprep.subr.bf16.mxu0 %v5039_v1 }
  0x27   :  { %4547 = vmatpush3.bf16.msra.mxu0 %v4809_v25  ;;  %v4859_v25 = vld [vmem:[%s6323_s1 + $0x1f8] sm:$0xff]  }
  0x28   :  { %4548 = vmatprep.subr.bf16.mxu0 %v5039_v1 }
  0x2b   :  { %4549 = vmatpush3.bf16.msra.mxu0 %v4811_v28 }
  0x2c   :  { %4550 = vmatprep.subr.bf16.mxu0 %v5039_v1 }
  0x2f   :  { %4551 = vmatpush3.bf16.msra.mxu0 %v4813_v29  ;;  %v4863_v29 = vld [vmem:[%s6323_s1 + $0x210] sm:$0xff]  }
  0x30   :  { %4572 = vmatprep.subr.bf16.mxu0 %v5039_v1 }
  0x76   :  { %v146_v32 = vpop.permute.xlu0 %145  ;;  %v244_v33 = vpop.permute.xlu1 %243 }
  0x77   :  { %4537 = vmatmul.mubr.msk.bf16.vlgmr.msra.gmra.mrb[0].mxu1 %vm85_vm1, %v146_v32  ;;  %v4864_v32 = vld [vmem:[%s6323_s1 + $0x218] sm:$0xff]  }
  0x78   :  { %4557 = vmatpush3.bf16.msra.mxu1 %v4812_v31  ;;  %4568 = vmatprep.mubr.msk.bf16.mxu1 %vm5040_vm0, %v5039_v1 }
  0x79   :  { %4558 = vmatprep.subr.bf16.mxu1 %v5039_v1 }
  0x7a   :  { %v242_v36 = vpop.permute.xlu0 %241  ;;  %v340_v46 = vpop.permute.xlu1 %339 }
  0x7b   :  { %v246_v37 = vsel %vm245_vm2, %v242_v36, %v244_v33  ;;  %v4870_v36 = vld [vmem:[%s6323_s1 + $0x248] sm:$0xff]  }
  0x7c   :  { %4559 = vmatpush3.bf16.msra.mxu1 %v4814_v34  ;;  %4553 = vmatmul.mubr.msk.bf16.vlgmr.msra.gmra.mrb[4].mxu0 %vm85_vm1, %v246_v37  ;;  %v4869_v34 = vld [vmem:[%s6323_s1 + $0x240] sm:$0xff]   ;;  %v4866_v37 = vld [vmem:[%s6323_s1 + $0x228] sm:$0xff]  }
  0x7d   :  { %4573 = vmatpush3.bf16.msra.mxu0 %v4815_v35  ;;  %4560 = vmatprep.subr.bf16.mxu1 %v5039_v1  ;;  %v4865_v35 = vld [vmem:[%s6323_s1 + $0x220] sm:$0xff]  }
  0x7e   :  { %4574 = vmatprep.subr.bf16.mxu0 %v5039_v1  ;;  %4584 = vmatprep.mubr.msk.bf16.mxu0 %vm5040_vm0, %v5039_v1  ;;  %v437_v49 = vpop.permute.xlu0 %436  ;;  %v532_v61 = vpop.permute.xlu1 %531 }
  0x7f   :  { %v438_v52 = vsel %vm245_vm2, %v244_v33, %v437_v49 }
  0x80   :  { %4561 = vmatpush3.bf16.msra.mxu1 %v4816_v38  ;;  %v4871_v38 = vld [vmem:[%s6323_s1 + $0x250] sm:$0xff]  }
  0x81   :  { %4575 = vmatpush3.bf16.msra.mxu0 %v4817_v39  ;;  %4562 = vmatprep.subr.bf16.mxu1 %v5039_v1  ;;  %v4867_v39 = vld [vmem:[%s6323_s1 + $0x230] sm:$0xff]  }
  0x82   :  { %4576 = vmatprep.subr.bf16.mxu0 %v5039_v1  ;;  %v628_v0 = vpop.permute.xlu0 %627  ;;  %v723_v13 = vpop.permute.xlu1 %722 }
  0x83   :  { %v629_v4 = vsel %vm245_vm2, %v437_v49, %v628_v0 }
  0x84   :  { %4563 = vmatpush3.bf16.msra.mxu1 %v4818_v40  ;;  %v4872_v40 = vld [vmem:[%s6323_s1 + $0x258] sm:$0xff]  }
  0x85   :  { %4577 = vmatpush3.bf16.msra.mxu0 %v4819_v41  ;;  %4564 = vmatprep.subr.bf16.mxu1 %v5039_v1  ;;  %v4868_v41 = vld [vmem:[%s6323_s1 + $0x238] sm:$0xff]  }
  0x86   :  { %4578 = vmatprep.subr.bf16.mxu0 %v5039_v1  ;;  %v820_v16 = vpop.permute.xlu0 %819  ;;  %v915_v28 = vpop.permute.xlu1 %914 }
  0x87   :  { %v821_v18 = vsel %vm245_vm2, %v628_v0, %v820_v16  ;;  %v4885_v0 = vld [vmem:[%s6323_s1 + $0x2c8] sm:$0xff]  }
  0x88   :  { %4565 = vmatpush3.bf16.msra.mxu1 %v4820_v42  ;;  %v4873_v42 = vld [vmem:[%s6323_s1 + $0x260] sm:$0xff]  }
  0x89   :  { %4579 = vmatpush3.bf16.msra.mxu0 %v4821_v43  ;;  %4566 = vmatprep.subr.bf16.mxu1 %v5039_v1 }
  0x8a   :  { %4580 = vmatprep.subr.bf16.mxu0 %v5039_v1  ;;  %v1011_v31 = vpop.permute.xlu0 %1010  ;;  %v1106_v43 = vpop.permute.xlu1 %1105 }
  0x8b   :  { %v1012_v33 = vsel %vm245_vm2, %v820_v16, %v1011_v31 }
  0x8c   :  { %4567 = vmatpush3.bf16.msra.mxu1 %v4822_v44  ;;  %v4876_v44 = vld [vmem:[%s6323_s1 + $0x270] sm:$0xff]  }
  0x8d   :  { %4581 = vmatpush3.bf16.msra.mxu0 %v4823_v45  ;;  %4588 = vmatprep.subr.bf16.mxu1 %v5039_v1  ;;  %v4874_v45 = vld [vmem:[%s6323_s1 + $0x268] sm:$0xff]  }
  0x8e   :  { %4582 = vmatprep.subr.bf16.mxu0 %v5039_v1 }
  0x8f   :  { %4569 = vmatmul.mubr.msk.bf16.vlgmr.msra.gmra.mrb[4].mxu1 %vm85_vm1, %v340_v46  ;;  %v1203_v46 = vpop.permute.xlu0 %1202 }
  0x90   :  { %4589 = vmatpush3.bf16.msra.mxu1 %v4824_v47  ;;  %4600 = vmatprep.mubr.msk.bf16.mxu1 %vm5040_vm0, %v5039_v1 }
  0x91   :  { %4583 = vmatpush3.bf16.msra.mxu0 %v4825_v48  ;;  %4590 = vmatprep.subr.bf16.mxu1 %v5039_v1  ;;  %v4878_v48 = vld [vmem:[%s6323_s1 + $0x278] sm:$0xff]  }
  0x92   :  { %4604 = vmatprep.subr.bf16.mxu0 %v5039_v1 }
  0x94   :  { %4585 = vmatmul.mubr.msk.bf16.vlgmr.msra.gmra.mrb[8].mxu0 %vm85_vm1, %v438_v52  ;;  %4591 = vmatpush3.bf16.msra.mxu1 %v4826_v50  ;;  %v1204_v50 = vsel %vm245_vm2, %v1011_v31, %v1203_v46 }
  0x95   :  { %4605 = vmatpush3.bf16.msra.mxu0 %v4827_v51  ;;  %4592 = vmatprep.subr.bf16.mxu1 %v5039_v1  ;;  %v4875_v51 = vld [vmem:[%s6323_s1 + $0x2a0] sm:$0xff]  }
  0x96   :  { %4606 = vmatprep.subr.bf16.mxu0 %v5039_v1  ;;  %4616 = vmatprep.mubr.msk.bf16.mxu0 %vm5040_vm0, %v5039_v1 }
  0x98   :  { %4593 = vmatpush3.bf16.msra.mxu1 %v4828_v53 }
  0x99   :  { %4607 = vmatpush3.bf16.msra.mxu0 %v4830_v54  ;;  %4594 = vmatprep.subr.bf16.mxu1 %v5039_v1  ;;  %v4880_v54 = vld [vmem:[%s6323_s1 + $0x280] sm:$0xff]  }
  0x9a   :  { %4608 = vmatprep.subr.bf16.mxu0 %v5039_v1 }
  0x9c   :  { %4595 = vmatpush3.bf16.msra.mxu1 %v4831_v55  ;;  %v4877_v55 = vld [vmem:[%s6323_s1 + $0x2a8] sm:$0xff]  }
  0x9d   :  { %4609 = vmatpush3.bf16.msra.mxu0 %v4832_v56  ;;  %4596 = vmatprep.subr.bf16.mxu1 %v5039_v1  ;;  %v4882_v56 = vld [vmem:[%s6323_s1 + $0x288] sm:$0xff]  }
  0x9e   :  { %4610 = vmatprep.subr.bf16.mxu0 %v5039_v1 }
  0xa0   :  { %4597 = vmatpush3.bf16.msra.mxu1 %v4833_v57  ;;  %v4879_v57 = vld [vmem:[%s6323_s1 + $0x2b0] sm:$0xff]  }
  0xa1   :  { %4611 = vmatpush3.bf16.msra.mxu0 %v4834_v58  ;;  %4598 = vmatprep.subr.bf16.mxu1 %v5039_v1  ;;  %v4884_v58 = vld [vmem:[%s6323_s1 + $0x290] sm:$0xff]  }
  0xa2   :  { %4612 = vmatprep.subr.bf16.mxu0 %v5039_v1 }
  0xa4   :  { %4599 = vmatpush3.bf16.msra.mxu1 %v4835_v59  ;;  %v4881_v59 = vld [vmem:[%s6323_s1 + $0x2b8] sm:$0xff]  }
  0xa5   :  { %4613 = vmatpush3.bf16.msra.mxu0 %v4836_v60  ;;  %4620 = vmatprep.subr.bf16.mxu1 %v5039_v1  ;;  %v4886_v60 = vld [vmem:[%s6323_s1 + $0x298] sm:$0xff]  }
  0xa6   :  { %4614 = vmatprep.subr.bf16.mxu0 %v5039_v1 }
  0xa7   :  { %4601 = vmatmul.mubr.msk.bf16.vlgmr.msra.gmra.mrb[8].mxu1 %vm85_vm1, %v532_v61  ;;  %v4883_v61 = vld [vmem:[%s6323_s1 + $0x2c0] sm:$0xff]  }
  0xa8   :  { %4621 = vmatpush3.bf16.msra.mxu1 %v4837_v62  ;;  %4632 = vmatprep.mubr.msk.bf16.mxu1 %vm5040_vm0, %v5039_v1  ;;  %v1298_v62 = vpop.permute.xlu1 %1297 }
  0xa9   :  { %4615 = vmatpush3.bf16.msra.mxu0 %v4838_v63  ;;  %4622 = vmatprep.subr.bf16.mxu1 %v5039_v1  ;;  %v4887_v63 = vld [vmem:[%s6323_s1 + $0x2d0] sm:$0xff]  }
  0xaa   :  { %4636 = vmatprep.subr.bf16.mxu0 %v5039_v1 }
  0xac   :  { %4617 = vmatmul.mubr.msk.bf16.vlgmr.msra.gmra.mrb[12].mxu0 %vm85_vm1, %v629_v4  ;;  %4623 = vmatpush3.bf16.msra.mxu1 %v4839_v2  ;;  %v1394_v2 = vpop.permute.xlu0 %1393 }
  0xad   :  { %4637 = vmatpush3.bf16.msra.mxu0 %v4840_v3  ;;  %4624 = vmatprep.subr.bf16.mxu1 %v5039_v1  ;;  %v4888_v3 = vld [vmem:[%s6323_s1 + $0x2d8] sm:$0xff]   ;;  %v1395_v4 = vsel %vm245_vm2, %v1203_v46, %v1394_v2  ;;  %v5639_v2 = vld [vmem:[%s6325_s2] sm:$0x3f] }
  0xae   :  { %4638 = vmatprep.subr.bf16.mxu0 %v5039_v1  ;;  %4648 = vmatprep.mubr.msk.bf16.mxu0 %vm5040_vm0, %v5039_v1 }
  0xb0   :  { %4625 = vmatpush3.bf16.msra.mxu1 %v4842_v5  ;;  %v4889_v5 = vld [vmem:[%s6323_s1 + $0x2e0] sm:$0xff]  }
  0xb1   :  { %4639 = vmatpush3.bf16.msra.mxu0 %v4843_v6  ;;  %4626 = vmatprep.subr.bf16.mxu1 %v5039_v1  ;;  %v4890_v6 = vld [vmem:[%s6323_s1 + $0x2e8] sm:$0xff]  }
  0xb2   :  { %4640 = vmatprep.subr.bf16.mxu0 %v5039_v1 }
  0xb4   :  { %4627 = vmatpush3.bf16.msra.mxu1 %v4844_v7  ;;  %v4891_v7 = vld [vmem:[%s6323_s1 + $0x2f0] sm:$0xff]  }
  0xb5   :  { %4641 = vmatpush3.bf16.msra.mxu0 %v4845_v8  ;;  %4628 = vmatprep.subr.bf16.mxu1 %v5039_v1  ;;  %v4892_v8 = vld [vmem:[%s6323_s1 + $0x2f8] sm:$0xff]   ;;  %s5047_s1 = smov 112  }
  0xb6   :  { %4642 = vmatprep.subr.bf16.mxu0 %v5039_v1 }
  0xb8   :  { %4629 = vmatpush3.bf16.msra.mxu1 %v4846_v9  ;;  %v1489_v9 = vpop.permute.xlu1 %1488 }
  0xb9   :  { %4643 = vmatpush3.bf16.msra.mxu0 %v4847_v10  ;;  %4630 = vmatprep.subr.bf16.mxu1 %v5039_v1 }
  0xba   :  { %4644 = vmatprep.subr.bf16.mxu0 %v5039_v1 }
  0xbc   :  { %4631 = vmatpush3.bf16.msra.mxu1 %v4848_v11 }
  0xbd   :  { %4645 = vmatpush3.bf16.msra.mxu0 %v4849_v12  ;;  %4652 = vmatprep.subr.bf16.mxu1 %v5039_v1 }
  0xbe   :  { %4646 = vmatprep.subr.bf16.mxu0 %v5039_v1 }
  0xbf   :  { %4633 = vmatmul.mubr.msk.bf16.vlgmr.msra.gmra.mrb[12].mxu1 %vm85_vm1, %v723_v13 }
  0xc0   :  { %4653 = vmatpush3.bf16.msra.mxu1 %v4850_v14  ;;  %4664 = vmatprep.mubr.msk.bf16.mxu1 %vm5040_vm0, %v5039_v1  ;;  %v5044_v14 = vmov 0  }
  0xc1   :  { %4647 = vmatpush3.bf16.msra.mxu0 %v4851_v15  ;;  %4654 = vmatprep.subr.bf16.mxu1 %v5039_v1 }
  0xc2   :  { %4668 = vmatprep.subr.bf16.mxu0 %v5039_v1 }
  0xc4   :  { %4655 = vmatpush3.bf16.msra.mxu1 %v4852_v17  ;;  %4649 = vmatmul.mubr.msk.bf16.vlgmr.msra.gmra.mrb[16].mxu0 %vm85_vm1, %v821_v18 }
  0xc5   :  { %4669 = vmatpush3.bf16.msra.mxu0 %v4853_v19  ;;  %4656 = vmatprep.subr.bf16.mxu1 %v5039_v1  ;;  %v4893_v19 = vld [vmem:[%s6324_s3] sm:$0xff]  }
  0xc6   :  { %4670 = vmatprep.subr.bf16.mxu0 %v5039_v1  ;;  %4680 = vmatprep.mubr.msk.bf16.mxu0 %vm5040_vm0, %v5039_v1 }
  0xc8   :  { %4657 = vmatpush3.bf16.msra.mxu1 %v4854_v20  ;;  %v4894_v20 = vld [vmem:[%s6324_s3 + $0x8] sm:$0xff]  }
  0xc9   :  { %4671 = vmatpush3.bf16.msra.mxu0 %v4855_v21  ;;  %4658 = vmatprep.subr.bf16.mxu1 %v5039_v1  ;;  %v4895_v21 = vld [vmem:[%s6324_s3 + $0x10] sm:$0xff]  }
  0xca   :  { %4672 = vmatprep.subr.bf16.mxu0 %v5039_v1 }
  0xcc   :  { %4659 = vmatpush3.bf16.msra.mxu1 %v4856_v22  ;;  %v4896_v22 = vld [vmem:[%s6324_s3 + $0x18] sm:$0xff]  }
  0xcd   :  { %4673 = vmatpush3.bf16.msra.mxu0 %v4857_v23  ;;  %4660 = vmatprep.subr.bf16.mxu1 %v5039_v1  ;;  %v4897_v23 = vld [vmem:[%s6324_s3 + $0x20] sm:$0xff]  }
  0xce   :  { %4674 = vmatprep.subr.bf16.mxu0 %v5039_v1 }
  0xd0   :  { %4661 = vmatpush3.bf16.msra.mxu1 %v4858_v24 }
  0xd1   :  { %4675 = vmatpush3.bf16.msra.mxu0 %v4859_v25  ;;  %4662 = vmatprep.subr.bf16.mxu1 %v5039_v1 }
  0xd2   :  { %4676 = vmatprep.subr.bf16.mxu0 %v5039_v1 }
  0xd4   :  { %4663 = vmatpush3.bf16.msra.mxu1 %v4860_v26 }
  0xd5   :  { %4677 = vmatpush3.bf16.msra.mxu0 %v4861_v27  ;;  %4684 = vmatprep.subr.bf16.mxu1 %v5039_v1 }
  0xd6   :  { %4678 = vmatprep.subr.bf16.mxu0 %v5039_v1 }
  0xd7   :  { %4665 = vmatmul.mubr.msk.bf16.vlgmr.msra.gmra.mrb[16].mxu1 %vm85_vm1, %v915_v28  ;;  %v4898_v28 = vld [vmem:[%s6324_s3 + $0x28] sm:$0xff]  }
  0xd8   :  { %4685 = vmatpush3.bf16.msra.mxu1 %v4863_v29  ;;  %4696 = vmatprep.mubr.msk.bf16.mxu1 %vm5040_vm0, %v5039_v1 }
  0xd9   :  { %4679 = vmatpush3.bf16.msra.mxu0 %v4862_v30  ;;  %4686 = vmatprep.subr.bf16.mxu1 %v5039_v1 }
  0xda   :  { %4700 = vmatprep.subr.bf16.mxu0 %v5039_v1 }
  0xdc   :  { %4681 = vmatmul.mubr.msk.bf16.vlgmr.msra.gmra.mrb[20].mxu0 %vm85_vm1, %v1012_v33  ;;  %4687 = vmatpush3.bf16.msra.mxu1 %v4864_v32  ;;  %v4899_v32 = vld [vmem:[%s6324_s3 + $0x30] sm:$0xff]  }
  0xdd   :  { %4688 = vmatprep.subr.bf16.mxu1 %v5039_v1  ;;  %4701 = vmatpush3.bf16.msra.mxu0 %v4869_v34  ;;  %v4900_v34 = vld [vmem:[%s6324_s3 + $0x38] sm:$0xff]  }
  0xde   :  { %4702 = vmatprep.subr.bf16.mxu0 %v5039_v1  ;;  %4712 = vmatprep.mubr.msk.bf16.mxu0 %vm5040_vm0, %v5039_v1 }
  0xe0   :  { %4689 = vmatpush3.bf16.msra.mxu1 %v4865_v35  ;;  %v4901_v35 = vld [vmem:[%s6324_s3 + $0x40] sm:$0xff]  }
  0xe1   :  { %4690 = vmatprep.subr.bf16.mxu1 %v5039_v1  ;;  %4703 = vmatpush3.bf16.msra.mxu0 %v4870_v36 }
  0xe2   :  { %4704 = vmatprep.subr.bf16.mxu0 %v5039_v1 }
  0xe4   :  { %4691 = vmatpush3.bf16.msra.mxu1 %v4866_v37 }
  0xe5   :  { %4692 = vmatprep.subr.bf16.mxu1 %v5039_v1  ;;  %4705 = vmatpush3.bf16.msra.mxu0 %v4871_v38 }
  0xe6   :  { %4706 = vmatprep.subr.bf16.mxu0 %v5039_v1 }
  0xe8   :  { %4693 = vmatpush3.bf16.msra.mxu1 %v4867_v39 }
  0xe9   :  { %4694 = vmatprep.subr.bf16.mxu1 %v5039_v1  ;;  %4707 = vmatpush3.bf16.msra.mxu0 %v4872_v40 }
  0xea   :  { %4708 = vmatprep.subr.bf16.mxu0 %v5039_v1 }
  0xec   :  { %4695 = vmatpush3.bf16.msra.mxu1 %v4868_v41 }
  0xed   :  { %4709 = vmatpush3.bf16.msra.mxu0 %v4873_v42  ;;  %4716 = vmatprep.subr.bf16.mxu1 %v5039_v1  ;;  %v5500_v47 = vpop.f32.mrb[0].mxu0 }
  0xee   :  { %4710 = vmatprep.subr.bf16.mxu0 %v5039_v1  ;;  %v4522_v49 = vpop.f32.mrb[1].mxu0 }
  0xef   :  { %4697 = vmatmul.mubr.msk.bf16.vlgmr.msra.gmra.mrb[20].mxu1 %vm85_vm1, %v1106_v43  ;;  %v126_v52 = vpop.f32.mrb[2].mxu0 }
  0xf0   :  { %4717 = vmatpush3.bf16.msra.mxu1 %v4876_v44  ;;  %4728 = vmatprep.mubr.msk.bf16.mxu1 %vm5040_vm0, %v5039_v1  ;;  %v4523_v53 = vpop.f32.mrb[3].mxu0 }
  0xf1   :  { %4711 = vmatpush3.bf16.msra.mxu0 %v4874_v45  ;;  %4718 = vmatprep.subr.bf16.mxu1 %v5039_v1 }
  0xf2   :  { %4732 = vmatprep.subr.bf16.mxu0 %v5039_v1 }
  0xf4   :  { %4713 = vmatmul.mubr.msk.bf16.vlgmr.msra.gmra.mrb[24].mxu0 %vm85_vm1, %v1204_v50  ;;  %4719 = vmatpush3.bf16.msra.mxu1 %v4878_v48 }
  0xf5   :  { %4733 = vmatpush3.bf16.msra.mxu0 %v4875_v51  ;;  %4720 = vmatprep.subr.bf16.mxu1 %v5039_v1 }
  0xf6   :  { %4734 = vmatprep.subr.bf16.mxu0 %v5039_v1  ;;  %4744 = vmatprep.mubr.msk.bf16.mxu0 %vm5040_vm0, %v5039_v1 }
  0xf8   :  { %4721 = vmatpush3.bf16.msra.mxu1 %v4880_v54 }
  0xf9   :  { %4735 = vmatpush3.bf16.msra.mxu0 %v4877_v55  ;;  %4722 = vmatprep.subr.bf16.mxu1 %v5039_v1 }
  0xfa   :  { %4736 = vmatprep.subr.bf16.mxu0 %v5039_v1 }
  0xfc   :  { %4723 = vmatpush3.bf16.msra.mxu1 %v4882_v56 }
  0xfd   :  { %4737 = vmatpush3.bf16.msra.mxu0 %v4879_v57  ;;  %4724 = vmatprep.subr.bf16.mxu1 %v5039_v1 }
  0xfe   :  { %4738 = vmatprep.subr.bf16.mxu0 %v5039_v1 }
 0x100   :  { %4725 = vmatpush3.bf16.msra.mxu1 %v4884_v58 }
 0x101   :  { %4739 = vmatpush3.bf16.msra.mxu0 %v4881_v59  ;;  %4726 = vmatprep.subr.bf16.mxu1 %v5039_v1 }
 0x102   :  { %4740 = vmatprep.subr.bf16.mxu0 %v5039_v1 }
 0x104   :  { %4727 = vmatpush3.bf16.msra.mxu1 %v4886_v60 }
 0x105   :  { %4741 = vmatpush3.bf16.msra.mxu0 %v4883_v61  ;;  %4748 = vmatprep.subr.bf16.mxu1 %v5039_v1  ;;  %v1647_v61 = vlaneseq }
 0x106   :  { %4742 = vmatprep.subr.bf16.mxu0 %v5039_v1 }
 0x107   :  { %4729 = vmatmul.mubr.msk.bf16.vlgmr.msra.gmra.mrb[24].mxu1 %vm85_vm1, %v1298_v62  ;;  %v5631_v62 = vshrl.u32 %v1647_v61, 7 }
 0x108   :  { %4749 = vmatpush3.bf16.msra.mxu1 %v4887_v63  ;;  %4760 = vmatprep.mubr.msk.bf16.mxu1 %vm5040_vm0, %v5039_v1 }
 0x109   :  { %4743 = vmatpush3.bf16.msra.mxu0 %v4885_v0  ;;  %4750 = vmatprep.subr.bf16.mxu1 %v5039_v1  ;;  %v5634_v63 = vsub.s32 0, %v5631_v62 }
 0x10a   :  { %1776 = vmatprep.subr.bf16.mxu0 %v5044_v14 }
 0x10c   :  { %4745 = vmatmul.mubr.msk.bf16.vlgmr.msra.gmra.mrb[28].mxu0 %vm85_vm1, %v1395_v4  ;;  %4751 = vmatpush3.bf16.msra.mxu1 %v4888_v3  ;;  %v4902_v3 = vld [vmem:[%s6324_s3 + $0x48] sm:$0xff]   ;;  %v1650_v4 = vrot.slane %v5639_v2, %v5634_v63 }
 0x10d   :  { %4752 = vmatprep.subr.bf16.mxu1 %v5039_v1  ;;  %1777 = vmatpush1.bf16.msra.mxu0 %v4893_v19  ;;  %v4905_v19 = vld [vmem:[%s6324_s3 + $0x60] sm:$0xff]  }
 0x10e   :  { %1778 = vmatprep.subr.bf16.mxu0 %v5044_v14 }
 0x110   :  { %4753 = vmatpush3.bf16.msra.mxu1 %v4889_v5  ;;  %v4903_v5 = vld [vmem:[%s6324_s3 + $0x50] sm:$0xff]  }
 0x111   :  { %4754 = vmatprep.subr.bf16.mxu1 %v5039_v1  ;;  %1779 = vmatpush1.bf16.msra.mxu0 %v4894_v20 }
 0x112   :  { %1780 = vmatprep.subr.bf16.mxu0 %v5044_v14 }
 0x114   :  { %4755 = vmatpush3.bf16.msra.mxu1 %v4890_v6 }
 0x115   :  { %4756 = vmatprep.subr.bf16.mxu1 %v5039_v1  ;;  %1781 = vmatpush1.bf16.msra.mxu0 %v4895_v21 }
 0x116   :  { %1782 = vmatprep.subr.bf16.mxu0 %v5044_v14 }
 0x118   :  { %4757 = vmatpush3.bf16.msra.mxu1 %v4891_v7 }
 0x119   :  { %4758 = vmatprep.subr.bf16.mxu1 %v5039_v1  ;;  %1783 = vmatpush1.bf16.msra.mxu0 %v4896_v22 }
 0x11a   :  { %1784 = vmatprep.subr.bf16.mxu0 %v5044_v14 }
 0x11c   :  { %4759 = vmatpush3.bf16.msra.mxu1 %v4892_v8 }
 0x11d   :  { %1901 = vmatprep.subr.bf16.mxu1 %v5044_v14  ;;  %1785 = vmatpush1.bf16.msra.mxu0 %v4897_v23  ;;  %v4906_v23 = vld [vmem:[%s6324_s3 + $0x68] sm:$0xff]  }
 0x11e   :  { %1786 = vmatprep.subr.bf16.mxu0 %v5044_v14 }
 0x11f   :  { %4761 = vmatmul.mubr.msk.bf16.vlgmr.msra.gmra.mrb[28].mxu1 %vm85_vm1, %v1489_v9 }
 0x120   :  { %1902 = vmatpush1.bf16.msra.mxu1 %v4902_v3  ;;  %v4916_v3 = vld [vmem:[%s6324_s3 + $0xb0] sm:$0xff]  }
 0x121   :  { %1787 = vmatpush1.bf16.msra.mxu0 %v4898_v28  ;;  %1903 = vmatprep.subr.bf16.mxu1 %v5044_v14 }
 0x122   :  { %1788 = vmatprep.subr.bf16.mxu0 %v5044_v14 }
 0x124   :  { %1904 = vmatpush1.bf16.msra.mxu1 %v4903_v5 }
 0x125   :  { %1789 = vmatpush1.bf16.msra.mxu0 %v4899_v32  ;;  %1905 = vmatprep.subr.bf16.mxu1 %v5044_v14 }
 0x126   :  { %1790 = vmatprep.subr.bf16.mxu0 %v5044_v14 }
 0x129   :  { %1791 = vmatpush1.bf16.msra.mxu0 %v4900_v34 }
 0x12a   :  { %1792 = vmatprep.subr.bf16.mxu0 %v5044_v14 }
 0x12d   :  { %1793 = vmatpush1.bf16.msra.mxu0 %v4901_v35 }
 0x12e   :  { %2025 = vmatprep.subr.bf16.mxu0 %v5044_v14 }
 0x14a   :  { %v220_v10 = vpop.f32.mrb[0].mxu1 }
 0x14b   :  { %1570 = vrot.lane.b32.xlu0 %v220_v10, %s5043_s11  ;;  %v4538_v11 = vpop.f32.mrb[1].mxu1 }
 0x14c   :  { %v223_v12 = vpop.f32.mrb[2].mxu1 }
 0x14d   :  { %v4539_v13 = vpop.f32.mrb[3].mxu1 }
 0x14e   :  { %v4904_v13 = vld [vmem:[%s6324_s3 + $0x58] sm:$0xff]  }
 0x14f   :  { %v320_v15 = vpop.f32.mrb[4].mxu0  ;;  %1906 = vmatpush1.bf16.msra.mxu1 %v4904_v13  ;;  %v1661_v13 = vsub.s32 3, %v5631_v62 }
 0x150   :  { %1574 = vrot.lane.b32.xlu0 %v320_v15, %s5041_s15  ;;  %v4554_v16 = vpop.f32.mrb[5].mxu0  ;;  %1907 = vmatprep.subr.bf16.mxu1 %v5044_v14 }
 0x151   :  { %v323_v17 = vpop.f32.mrb[6].mxu0 }
 0x152   :  { %v4555_v18 = vpop.f32.mrb[7].mxu0 }
 0x153   :  { %1908 = vmatpush1.bf16.msra.mxu1 %v4905_v19 }
 0x154   :  { %1909 = vmatprep.subr.bf16.mxu1 %v5044_v14 }
 0x157   :  { %1910 = vmatpush1.bf16.msra.mxu1 %v4906_v23 }
 0x158   :  { %1911 = vmatprep.subr.bf16.mxu1 %v5044_v14 }
 0x162   :  { %v414_v24 = vpop.f32.mrb[4].mxu1 }
 0x163   :  { %1578 = vrot.lane.b32.xlu1 %v414_v24, %s5045_s22  ;;  %v4570_v25 = vpop.f32.mrb[5].mxu1  ;;  %v4907_v24 = vld [vmem:[%s6324_s3 + $0x70] sm:$0xff]  }
 0x164   :  { %v417_v26 = vpop.f32.mrb[6].mxu1  ;;  %1912 = vmatpush1.bf16.msra.mxu1 %v4907_v24  ;;  %v4908_v25 = vld [vmem:[%s6324_s3 + $0x78] sm:$0xff]  }
 0x165   :  { %v4571_v27 = vpop.f32.mrb[7].mxu1  ;;  %1913 = vmatprep.subr.bf16.mxu1 %v5044_v14  ;;  %v4910_v26 = vld [vmem:[%s6324_s3 + $0x80] sm:$0xff]  }
 0x167   :  { %v512_v29 = vpop.f32.mrb[8].mxu0 }
 0x168   :  { %1582 = vrot.lane.b32.xlu1 %v512_v29, %s5046_s25  ;;  %v4586_v30 = vpop.f32.mrb[9].mxu0  ;;  %1914 = vmatpush1.bf16.msra.mxu1 %v4908_v25  ;;  %v4915_v25 = vld [vmem:[%s6324_s3 + $0xd8] sm:$0xff]  }
 0x169   :  { %v515_v31 = vpop.f32.mrb[10].mxu0  ;;  %1915 = vmatprep.subr.bf16.mxu1 %v5044_v14  ;;  %v4912_v30 = vld [vmem:[%s6324_s3 + $0x88] sm:$0xff]  }
 0x16a   :  { %v4587_v33 = vpop.f32.mrb[11].mxu0 }
 0x16c   :  { %1916 = vmatpush1.bf16.msra.mxu1 %v4910_v26  ;;  %v1665_v26 = vsub.s32 4, %v5631_v62 }
 0x16d   :  { %1917 = vmatprep.subr.bf16.mxu1 %v5044_v14 }
 0x170   :  { %1918 = vmatpush1.bf16.msra.mxu1 %v4912_v30  ;;  %v4917_v30 = vld [vmem:[%s6324_s3 + $0xe0] sm:$0xff]  }
 0x171   :  { %2148 = vmatprep.subr.bf16.mxu1 %v5044_v14 }
 0x17a   :  { %v606_v36 = vpop.f32.mrb[8].mxu1 }
 0x17b   :  { %v4602_v37 = vpop.f32.mrb[9].mxu1  ;;  %1586 = vrot.lane.b32.xlu0 %v606_v36, %s5047_s1 }
 0x17c   :  { %v609_v38 = vpop.f32.mrb[10].mxu1  ;;  %v5686_v37 = vsub.s32 1, %v5631_v62 }
 0x17d   :  { %v4603_v39 = vpop.f32.mrb[11].mxu1 }
 0x17e   :  { %v1654_v39 = vrot.slane %v5639_v2, %v5686_v37 }
 0x17f   :  { %v703_v40 = vpop.f32.mrb[12].mxu0 }
 0x180   :  { %1590 = vrot.lane.b32.xlu1 %v703_v40, %s5042_s16  ;;  %v4618_v41 = vpop.f32.mrb[13].mxu0 }
 0x181   :  { %v706_v42 = vpop.f32.mrb[14].mxu0 }
 0x182   :  { %v4619_v43 = vpop.f32.mrb[15].mxu0 }
 0x192   :  { %v797_v44 = vpop.f32.mrb[12].mxu1 }
 0x193   :  { %1594 = vrot.lane.b32.xlu0 %v797_v44, %s5048_s12  ;;  %v4634_v45 = vpop.f32.mrb[13].mxu1 }
 0x194   :  { %v800_v46 = vpop.f32.mrb[14].mxu1 }
 0x195   :  { %v4635_v48 = vpop.f32.mrb[15].mxu1 }
 0x197   :  { %v5627_v49 = vpop.f32.mrb[16].mxu0 }
 0x198   :  { %v4650_v50 = vpop.f32.mrb[17].mxu0 }
 0x199   :  { %v898_v51 = vpop.f32.mrb[18].mxu0 }
 0x19a   :  { %v4651_v52 = vpop.f32.mrb[19].mxu0 }
 0x1aa   :  { %v989_v53 = vpop.f32.mrb[16].mxu1 }
 0x1ab   :  { %1598 = vrot.lane.b32.xlu1 %v989_v53, %s5043_s11  ;;  %v4666_v54 = vpop.f32.mrb[17].mxu1 }
 0x1ac   :  { %v992_v55 = vpop.f32.mrb[18].mxu1  ;;  %v4909_v54 = vld [vmem:[%s6324_s3 + $0x90] sm:$0xff]  }
 0x1ad   :  { %v4667_v56 = vpop.f32.mrb[19].mxu1  ;;  %v4911_v55 = vld [vmem:[%s6324_s3 + $0x98] sm:$0xff]  }
 0x1ae   :  { %v4913_v56 = vld [vmem:[%s6324_s3 + $0xa0] sm:$0xff]  }
 0x1af   :  { %v1086_v57 = vpop.f32.mrb[20].mxu0 }
 0x1b0   :  { %1602 = vrot.lane.b32.xlu0 %v1086_v57, %s5041_s15  ;;  %v4682_v58 = vpop.f32.mrb[21].mxu0  ;;  %v5709_v57 = vsub.s32 2, %v5631_v62 }
 0x1b1   :  { %v1089_v59 = vpop.f32.mrb[22].mxu0  ;;  %v4914_v58 = vld [vmem:[%s6324_s3 + $0xa8] sm:$0xff]  }
 0x1b2   :  { %v4683_v60 = vpop.f32.mrb[23].mxu0 }
 0x1b3   :  { %v1658_v60 = vrot.slane %v5639_v2, %v5709_v57 }
 0x1bd   :  { %v1571_v0 = vpop.permute.xlu0 %1570 }
 0x1be   :  { %v1626_v6 = vsel %vm1625_vm3, %v5500_v47, %v1571_v0 }
 0x1c2   :  { %v1575_v7 = vpop.permute.xlu0 %1574  ;;  %v1180_v8 = vpop.f32.mrb[20].mxu1 }
 0x1c3   :  { %v1627_v9 = vsel %vm85_vm1, %v1626_v6, %v1575_v7  ;;  %1606 = vrot.lane.b32.xlu1 %v1180_v8, %s5045_s22  ;;  %v4698_v10 = vpop.f32.mrb[21].mxu1 }
 0x1c4   :  { %v1677_v11 = vadd.f32 %v1650_v4, %v1627_v9  ;;  %v1183_v12 = vpop.f32.mrb[22].mxu1  ;;  %v4920_v10 = vld [vmem:[%s6324_s3 + $0xc0] sm:$0xff]  }
 0x1c5   :  { %v4699_v15 = vpop.f32.mrb[23].mxu1  ;;  %v4924_v12 = vld [vmem:[%s6324_s3 + $0xd0] sm:$0xff]  }
 0x1c6   :  { %v1683_v16 = vmul.f32 0.01, %v1677_v11 }
 0x1c7   :  { %v1278_v17 = vpop.f32.mrb[24].mxu0 }
 0x1c8   :  { %v1689_v47 = vmax.f32 %v1677_v11, %v1683_v16  ;;  %v4714_v18 = vpop.f32.mrb[25].mxu0  ;;  %v4922_v11 = vld [vmem:[%s6324_s3 + $0xc8] sm:$0xff]   ;;  %v1662_v16 = vrot.slane %v5639_v2, %v1661_v13 }
 0x1c9   :  { %v1281_v20 = vpop.f32.mrb[26].mxu0 }
 0x1ca   :  { %v1695_v21 = vpack.c.bf16 %v1689_v47, %v1689_v47  ;;  %v4715_v22 = vpop.f32.mrb[27].mxu0 }
 0x1cc   :  { %1837 = vrot.lane.b32.xlu1 %v1695_v21, %s5048_s12 }
 0x1d5   :  { %v1579_v36 = vpop.permute.xlu1 %1578 }
 0x1d6   :  { %v1629_v40 = vsel %vm1628_vm4, %v1575_v7, %v1579_v36  ;;  %v4918_v7 = vld [vmem:[%s6324_s3 + $0xb8] sm:$0xff]   ;;  %v4919_v36 = vld [vmem:[%s6324_s3 + $0xe8] sm:$0xff]  }
 0x1da   :  { %v1372_v27 = vpop.f32.mrb[24].mxu1  ;;  %v1583_v38 = vpop.permute.xlu1 %1582 }
 0x1db   :  { %v4730_v28 = vpop.f32.mrb[25].mxu1  ;;  %1614 = vrot.lane.b32.xlu1 %v1372_v27, %s5047_s1  ;;  %v1631_v41 = vsel %vm1630_vm5, %v1629_v40, %v1583_v38 }
 0x1dc   :  { %v1375_v29 = vpop.f32.mrb[26].mxu1  ;;  %v1666_v28 = vrot.slane %v5639_v2, %v1665_v26 }
 0x1dd   :  { %v4731_v31 = vpop.f32.mrb[27].mxu1 }
 0x1df   :  { %v1469_v32 = vpop.f32.mrb[28].mxu0 }
 0x1e0   :  { %v4746_v33 = vpop.f32.mrb[29].mxu0 }
 0x1e1   :  { %v1472_v34 = vpop.f32.mrb[30].mxu0 }
 0x1e2   :  { %v4747_v35 = vpop.f32.mrb[31].mxu0 }
 0x1ed   :  { %v1587_v42 = vpop.permute.xlu0 %1586 }
 0x1ee   :  { %v1633_v43 = vsel %vm1632_vm6, %v1631_v41, %v1587_v42 }
 0x1ef   :  { %v1678_v44 = vadd.f32 %v1654_v39, %v1633_v43  ;;  %v4921_v39 = vld [vmem:[%s6324_s3 + $0xf0] sm:$0xff]  }
 0x1f1   :  { %v1684_v45 = vmul.f32 0.01, %v1678_v44 }
 0x1f2   :  { %v1563_v46 = vpop.f32.mrb[28].mxu1  ;;  %v1591_v59 = vpop.permute.xlu1 %1590 }
 0x1f3   :  { %v1690_v48 = vmax.f32 %v1678_v44, %v1684_v45  ;;  %v4762_v50 = vpop.f32.mrb[29].mxu1  ;;  %v1635_v61 = vsel %vm245_vm2, %v1587_v42, %v1591_v59  ;;  %v4923_v42 = vld [vmem:[%s6324_s3 + $0xf8] sm:$0xff]   ;;  %v4925_v44 = vld [vmem:[%s6324_s3 + $0x100] sm:$0xff]  }
 0x1f4   :  { %v1566_v51 = vpop.f32.mrb[30].mxu1  ;;  %v4930_v59 = vld [vmem:[%s6324_s3 + $0x118] sm:$0xff]  }
 0x1f5   :  { %v1696_v52 = vpack.c.bf16 %v1690_v48, %v1690_v48  ;;  %v4763_v53 = vpop.f32.mrb[31].mxu1  ;;  %v4927_v48 = vld [vmem:[%s6324_s3 + $0x120] sm:$0xff]  }
 0x1f6   :  { %v4928_v53 = vld [vmem:[%s6324_s3 + $0x110] sm:$0xff]  }
 0x1f7   :  { %4013 = vmatprep.mubr.msk.bf16.mxu0 %vm1628_vm4, %v1696_v52  ;;  %1839 = vrot.lane.b32.xlu0 %v1696_v52, %s5048_s12 }
 0x1f8   :  { %1809 = vmatmul.mubr.bf16.vlgmr.msra.gmra.mrb[32].mxu0 %v1695_v21 }
 0x1f9   :  { %2026 = vmatpush1.bf16.msra.mxu0 %v4909_v54  ;;  %v4929_v54 = vld [vmem:[%s6324_s3 + $0x128] sm:$0xff]  }
 0x1fa   :  { %2027 = vmatprep.subr.bf16.mxu0 %v5044_v14 }
 0x1fb   :  { %1610 = vrot.lane.b32.xlu0 %v1278_v17, %s5046_s25 }
 0x1fd   :  { %2028 = vmatpush1.bf16.msra.mxu0 %v4911_v55 }
 0x1fe   :  { %2029 = vmatprep.subr.bf16.mxu0 %v5044_v14 }
 0x1ff   :  { %1961 = vrot.lane.b32.xlu0 %v1696_v52, %s5047_s1 }
 0x201   :  { %2030 = vmatpush1.bf16.msra.mxu0 %v4913_v56 }
 0x202   :  { %2031 = vmatprep.subr.bf16.mxu0 %v5044_v14 }
 0x203   :  { %2084 = vrot.lane.b32.xlu0 %v1696_v52, %s5045_s22  ;;  %v1669_v52 = vsub.s32 5, %v5631_v62 }
 0x205   :  { %v1595_v0 = vpop.permute.xlu0 %1594  ;;  %2032 = vmatpush1.bf16.msra.mxu0 %v4914_v58  ;;  %v1670_v58 = vrot.slane %v5639_v2, %v1669_v52  ;;  %v4962_v52 = vld [vmem:[%s6324_s3 + $0x228] sm:$0xff]  }
 0x206   :  { %v1637_v4 = vsel %vm1636_vm7, %v1635_v61, %v1595_v0  ;;  %2033 = vmatprep.subr.bf16.mxu0 %v5044_v14 }
 0x207   :  { %v1679_v5 = vadd.f32 %v1658_v60, %v1637_v4  ;;  %1618 = vrot.lane.b32.xlu0 %v1469_v32, %s5042_s16  ;;  %v4931_v60 = vld [vmem:[%s6324_s3 + $0x130] sm:$0xff]   ;;  %v4932_v4 = vld [vmem:[%s6324_s3 + $0x138] sm:$0xff]  }
 0x209   :  { %v1685_v6 = vmul.f32 0.01, %v1679_v5  ;;  %2034 = vmatpush1.bf16.msra.mxu0 %v4916_v3 }
 0x20a   :  { %2035 = vmatprep.subr.bf16.mxu0 %v5044_v14 }
 0x20b   :  { %v1691_v8 = vmax.f32 %v1679_v5, %v1685_v6  ;;  %v4938_v5 = vld [vmem:[%s6324_s3 + $0x168] sm:$0xff]  }
 0x20d   :  { %v1697_v9 = vpack.c.bf16 %v1691_v8, %v1691_v8  ;;  %2036 = vmatpush1.bf16.msra.mxu0 %v4918_v7 }
 0x20e   :  { %2037 = vmatprep.subr.bf16.mxu0 %v5044_v14 }
 0x20f   :  { %1963 = vrot.lane.b32.xlu1 %v1697_v9, %s5047_s1  ;;  %2208 = vrot.lane.b32.xlu0 %v1697_v9, %s5043_s11 }
 0x211   :  { %2038 = vmatpush1.bf16.msra.mxu0 %v4920_v10  ;;  %v4939_v10 = vld [vmem:[%s6324_s3 + $0x170] sm:$0xff]  }
 0x212   :  { %2039 = vmatprep.subr.bf16.mxu0 %v5044_v14 }
 0x213   :  { %2086 = vrot.lane.b32.xlu1 %v1697_v9, %s5045_s22  ;;  %v4933_v9 = vld [vmem:[%s6324_s3 + $0x140] sm:$0xff]  }
 0x215   :  { %2040 = vmatpush1.bf16.msra.mxu0 %v4922_v11 }
 0x216   :  { %2041 = vmatprep.subr.bf16.mxu0 %v5044_v14 }
 0x217   :  { %1622 = vrot.lane.b32.xlu1 %v1563_v46, %s5048_s12  ;;  %v4926_v46 = vld [vmem:[%s6324_s3 + $0x108] sm:$0xff]  }
 0x219   :  { %2042 = vmatpush1.bf16.msra.mxu0 %v4924_v12  ;;  %v4934_v12 = vld [vmem:[%s6324_s3 + $0x148] sm:$0xff]  }
 0x21a   :  { %2272 = vmatprep.subr.bf16.mxu0 %v5044_v14 }
 0x21d   :  { %v1599_v15 = vpop.permute.xlu1 %1598 }
 0x21e   :  { %v1638_v17 = vsel %vm1625_vm3, %v5627_v49, %v1599_v15  ;;  %v4940_v15 = vld [vmem:[%s6324_s3 + $0x178] sm:$0xff]  }
 0x222   :  { %v1603_v47 = vpop.permute.xlu0 %1602 }
 0x223   :  { %v1639_v18 = vsel %vm85_vm1, %v1638_v17, %v1603_v47  ;;  %v4941_v17 = vld [vmem:[%s6324_s3 + $0x180] sm:$0xff]  }
 0x224   :  { %v1680_v19 = vadd.f32 %v1662_v16, %v1639_v18  ;;  %v4935_v16 = vld [vmem:[%s6324_s3 + $0x150] sm:$0xff]   ;;  %v4942_v18 = vld [vmem:[%s6324_s3 + $0x188] sm:$0xff]  }
 0x226   :  { %v1686_v20 = vmul.f32 0.01, %v1680_v19 }
 0x228   :  { %v1692_v21 = vmax.f32 %v1680_v19, %v1686_v20  ;;  %v4937_v20 = vld [vmem:[%s6324_s3 + $0x160] sm:$0xff]  }
 0x22a   :  { %v1698_v22 = vpack.c.bf16 %v1692_v21, %v1692_v21  ;;  %v4943_v21 = vld [vmem:[%s6324_s3 + $0x190] sm:$0xff]  }
 0x22c   :  { %2210 = vrot.lane.b32.xlu1 %v1698_v22, %s5043_s11  ;;  %2332 = vrot.lane.b32.xlu0 %v1698_v22, %s5048_s12  ;;  %v4944_v22 = vld [vmem:[%s6324_s3 + $0x198] sm:$0xff]  }
 0x235   :  { %v1607_v23 = vpop.permute.xlu1 %1606 }
 0x236   :  { %v1640_v31 = vsel %vm1628_vm4, %v1603_v47, %v1607_v23  ;;  %v4936_v47 = vld [vmem:[%s6324_s3 + $0x158] sm:$0xff]   ;;  %v4946_v23 = vld [vmem:[%s6324_s3 + $0x1b0] sm:$0xff]  }
 0x23e   :  { %v1838_v24 = vpop.permute.xlu1 %1837 }
 0x24d   :  { %v1615_v29 = vpop.permute.xlu1 %1614 }
 0x269   :  { %v1840_v49 = vpop.permute.xlu0 %1839 }
 0x26a   :  { %v1842_v27 = vsel %vm1636_vm7, %v1838_v24, %v1840_v49  ;;  %4041 = vmatprep.mubr.msk.bf16.mxu1 %vm1628_vm4, %v1840_v49  ;;  %v4945_v49 = vld [vmem:[%s6324_s3 + $0x1a0] sm:$0xff]  }
 0x26b   :  { %1934 = vmatmul.mubr.bf16.vlgmr.msra.gmra.mrb[32].mxu1 %v1842_v27  ;;  %v4948_v27 = vld [vmem:[%s6324_s3 + $0x1b8] sm:$0xff]  }
 0x26c   :  { %2149 = vmatpush1.bf16.msra.mxu1 %v4915_v25 }
 0x26d   :  { %v1611_v32 = vpop.permute.xlu0 %1610  ;;  %2150 = vmatprep.subr.bf16.mxu1 %v5044_v14 }
 0x26e   :  { %v1641_v33 = vsel %vm1630_vm5, %v1640_v31, %v1611_v32  ;;  %v4953_v31 = vld [vmem:[%s6324_s3 + $0x1d0] sm:$0xff]   ;;  %v4955_v32 = vld [vmem:[%s6324_s3 + $0x1d8] sm:$0xff]  }
 0x26f   :  { %v1642_v34 = vsel %vm1632_vm6, %v1641_v33, %v1615_v29  ;;  %v4957_v33 = vld [vmem:[%s6324_s3 + $0x1e0] sm:$0xff]  }
 0x270   :  { %v1681_v35 = vadd.f32 %v1666_v28, %v1642_v34  ;;  %2151 = vmatpush1.bf16.msra.mxu1 %v4917_v30  ;;  %v4947_v28 = vld [vmem:[%s6324_s3 + $0x1a8] sm:$0xff]  }
 0x271   :  { %2152 = vmatprep.subr.bf16.mxu1 %v5044_v14  ;;  %v1962_v43 = vpop.permute.xlu0 %1961  ;;  %v4951_v30 = vld [vmem:[%s6324_s3 + $0x1c8] sm:$0xff]  }
 0x272   :  { %v1687_v38 = vmul.f32 0.01, %v1681_v35  ;;  %v4959_v34 = vld [vmem:[%s6324_s3 + $0x1e8] sm:$0xff]  }
 0x274   :  { %2153 = vmatpush1.bf16.msra.mxu1 %v4919_v36  ;;  %v1693_v40 = vmax.f32 %v1681_v35, %v1687_v38  ;;  %v4961_v35 = vld [vmem:[%s6324_s3 + $0x1f0] sm:$0xff]  }
 0x275   :  { %2154 = vmatprep.subr.bf16.mxu1 %v5044_v14  ;;  %v2085_v45 = vpop.permute.xlu0 %2084 }
 0x276   :  { %v1699_v41 = vpack.c.bf16 %v1693_v40, %v1693_v40 }
 0x278   :  { %2155 = vmatpush1.bf16.msra.mxu1 %v4921_v39  ;;  %2334 = vrot.lane.b32.xlu1 %v1699_v41, %s5048_s12 }
 0x279   :  { %2455 = vrot.lane.b32.xlu0 %v1699_v41, %s5047_s1  ;;  %2156 = vmatprep.subr.bf16.mxu1 %v5044_v14  ;;  %v1619_v56 = vpop.permute.xlu0 %1618 }
 0x27a   :  { %v1643_v61 = vsel %vm245_vm2, %v1615_v29, %v1619_v56  ;;  %v4949_v29 = vld [vmem:[%s6324_s3 + $0x1c0] sm:$0xff]  }
 0x27c   :  { %2157 = vmatpush1.bf16.msra.mxu1 %v4923_v42 }
 0x27d   :  { %2577 = vrot.lane.b32.xlu0 %v1699_v41, %s5045_s22  ;;  %2158 = vmatprep.subr.bf16.mxu1 %v5044_v14  ;;  %v4950_v41 = vld [vmem:[%s6324_s3 + $0x1f8] sm:$0xff]  }
 0x280   :  { %2159 = vmatpush1.bf16.msra.mxu1 %v4925_v44 }
 0x281   :  { %v1964_v50 = vpop.permute.xlu1 %1963  ;;  %2160 = vmatprep.subr.bf16.mxu1 %v5044_v14  ;;  %v2209_v24 = vpop.permute.xlu0 %2208 }
 0x282   :  { %v1966_v51 = vsel %vm1632_vm6, %v1962_v43, %v1964_v50  ;;  %4069 = vmatprep.mubr.msk.bf16.mxu0 %vm1628_vm4, %v1964_v50  ;;  %v4958_v50 = vld [vmem:[%s6324_s3 + $0x218] sm:$0xff]  }
 0x283   :  { %2058 = vmatmul.mubr.bf16.vlgmr.msra.gmra.mrb[36].mxu0 %v1966_v51  ;;  %v4960_v51 = vld [vmem:[%s6324_s3 + $0x220] sm:$0xff]  }
 0x284   :  { %2161 = vmatpush1.bf16.msra.mxu1 %v4926_v46  ;;  %2273 = vmatpush1.bf16.msra.mxu0 %v4927_v48  ;;  %v4954_v46 = vld [vmem:[%s6324_s3 + $0x208] sm:$0xff]   ;;  %v4956_v48 = vld [vmem:[%s6324_s3 + $0x210] sm:$0xff]  }
 0x285   :  { %v2087_v55 = vpop.permute.xlu1 %2086  ;;  %2162 = vmatprep.subr.bf16.mxu1 %v5044_v14  ;;  %2274 = vmatprep.subr.bf16.mxu0 %v5044_v14 }
 0x286   :  { %4097 = vmatprep.mubr.msk.bf16.mxu1 %vm1628_vm4, %v2087_v55  ;;  %v2089_v7 = vsel %vm1628_vm4, %v2085_v45, %v2087_v55  ;;  %v4952_v45 = vld [vmem:[%s6324_s3 + $0x200] sm:$0xff]  }
 0x288   :  { %2163 = vmatpush1.bf16.msra.mxu1 %v4928_v53  ;;  %2275 = vmatpush1.bf16.msra.mxu0 %v4929_v54  ;;  %v4965_v53 = vld [vmem:[%s6326_s5] sm:$0xff]   ;;  %v4963_v54 = vld [vmem:[%s6324_s3 + $0x230] sm:$0xff]  }
 0x289   :  { %v1623_v0 = vpop.permute.xlu1 %1622  ;;  %2164 = vmatprep.subr.bf16.mxu1 %v5044_v14  ;;  %2276 = vmatprep.subr.bf16.mxu0 %v5044_v14 }
 0x28a   :  { %v1644_v3 = vsel %vm1636_vm7, %v1643_v61, %v1623_v0  ;;  %v4967_v0 = vld [vmem:[%s6326_s5 + $0x10] sm:$0xff]  }
 0x28b   :  { %v1682_v2 = vadd.f32 %v1670_v58, %v1644_v3 }
 0x28c   :  { %2165 = vmatpush1.bf16.msra.mxu1 %v4930_v59  ;;  %2277 = vmatpush1.bf16.msra.mxu0 %v4931_v60  ;;  %v4966_v59 = vld [vmem:[%s6326_s5 + $0x8] sm:$0xff]   ;;  %v4964_v60 = vld [vmem:[%s6324_s3 + $0x238] sm:$0xff]  }
 0x28d   :  { %v1688_v6 = vmul.f32 0.01, %v1682_v2  ;;  %2278 = vmatprep.subr.bf16.mxu0 %v5044_v14  ;;  %2395 = vmatprep.subr.bf16.mxu1 %v5044_v14 }
 0x28f   :  { %2181 = vmatmul.mubr.bf16.vlgmr.msra.gmra.mrb[36].mxu1 %v2089_v7  ;;  %v1694_v8 = vmax.f32 %v1682_v2, %v1688_v6  ;;  %v4970_v6 = vld [vmem:[%s6326_s5 + $0x28] sm:$0xff]  }
 0x290   :  { %2279 = vmatpush1.bf16.msra.mxu0 %v4932_v4  ;;  %2396 = vmatpush1.bf16.msra.mxu1 %v4938_v5  ;;  %v4968_v4 = vld [vmem:[%s6326_s5 + $0x18] sm:$0xff]   ;;  %v4969_v5 = vld [vmem:[%s6326_s5 + $0x20] sm:$0xff]  }
 0x291   :  { %2280 = vmatprep.subr.bf16.mxu0 %v5044_v14  ;;  %v1700_v11 = vpack.c.bf16 %v1694_v8, %v1694_v8  ;;  %2397 = vmatprep.subr.bf16.mxu1 %v5044_v14 }
 0x293   :  { %2457 = vrot.lane.b32.xlu1 %v1700_v11, %s5047_s1  ;;  %s5049_s1 = smov 72  }
 0x294   :  { %2281 = vmatpush1.bf16.msra.mxu0 %v4933_v9  ;;  %2398 = vmatpush1.bf16.msra.mxu1 %v4939_v10  ;;  %v4971_v9 = vld [vmem:[%s6326_s5 + $0x30] sm:$0xff]  }
 0x295   :  { %2282 = vmatprep.subr.bf16.mxu0 %v5044_v14  ;;  %2399 = vmatprep.subr.bf16.mxu1 %v5044_v14 }
 0x297   :  { %2579 = vrot.lane.b32.xlu1 %v1700_v11, %s5045_s22 }
 0x298   :  { %2283 = vmatpush1.bf16.msra.mxu0 %v4934_v12  ;;  %2400 = vmatpush1.bf16.msra.mxu1 %v4940_v15  ;;  %v4972_v12 = vld [vmem:[%s6326_s5 + $0x38] sm:$0xff]   ;;  %v4973_v15 = vld [vmem:[%s6326_s5 + $0x40] sm:$0xff]  }
 0x299   :  { %2284 = vmatprep.subr.bf16.mxu0 %v5044_v14  ;;  %2401 = vmatprep.subr.bf16.mxu1 %v5044_v14 }
 0x29c   :  { %2285 = vmatpush1.bf16.msra.mxu0 %v4935_v16  ;;  %2402 = vmatpush1.bf16.msra.mxu1 %v4941_v17  ;;  %v4974_v16 = vld [vmem:[%s6326_s5 + $0x48] sm:$0xff]   ;;  %v4975_v17 = vld [vmem:[%s6326_s5 + $0x50] sm:$0xff]  }
 0x29d   :  { %2286 = vmatprep.subr.bf16.mxu0 %v5044_v14  ;;  %2403 = vmatprep.subr.bf16.mxu1 %v5044_v14 }
 0x29e   :  { %v2211_v19 = vpop.permute.xlu1 %2210  ;;  %v2333_v42 = vpop.permute.xlu0 %2332 }
 0x29f   :  { %4125 = vmatprep.mubr.msk.bf16.mxu0 %vm1628_vm4, %v2211_v19  ;;  %v2213_v25 = vsel %vm1625_vm3, %v2209_v24, %v2211_v19 }
 0x2a0   :  { %2287 = vmatpush1.bf16.msra.mxu0 %v4936_v47  ;;  %2404 = vmatpush1.bf16.msra.mxu1 %v4942_v18  ;;  %v4976_v47 = vld [vmem:[%s6326_s5 + $0x58] sm:$0xff]  }
 0x2a1   :  { %2288 = vmatprep.subr.bf16.mxu0 %v5044_v14  ;;  %2405 = vmatprep.subr.bf16.mxu1 %v5044_v14 }
 0x2a4   :  { %2289 = vmatpush1.bf16.msra.mxu0 %v4937_v20  ;;  %2406 = vmatpush1.bf16.msra.mxu1 %v4943_v21  ;;  %v4977_v20 = vld [vmem:[%s6326_s5 + $0x60] sm:$0xff]  }
 0x2a5   :  { %2407 = vmatprep.subr.bf16.mxu1 %v5044_v14  ;;  %2518 = vmatprep.subr.bf16.mxu0 %v5044_v14 }
 0x2a7   :  { %2305 = vmatmul.mubr.bf16.vlgmr.msra.gmra.mrb[40].mxu0 %v2213_v25 }
 0x2a8   :  { %2408 = vmatpush1.bf16.msra.mxu1 %v4944_v22  ;;  %2519 = vmatpush1.bf16.msra.mxu0 %v4946_v23  ;;  %v4978_v23 = vld [vmem:[%s6326_s5 + $0x68] ss:$0 sps:$4 sm:$0xff]  }
 0x2a9   :  { %2409 = vmatprep.subr.bf16.mxu1 %v5044_v14  ;;  %2520 = vmatprep.subr.bf16.mxu0 %v5044_v14  ;;  %v2879_v24 = vsel %vm2877_vm8, %v4978_v23, 0  ;;  %v4994_v23 = vld [vmem:[%s6326_s5 + $0xcc] sm:$0xff]  }
 0x2ac   :  { %2410 = vmatpush1.bf16.msra.mxu1 %v4945_v49  ;;  %2521 = vmatpush1.bf16.msra.mxu0 %v4948_v27 }
 0x2ad   :  { %2411 = vmatprep.subr.bf16.mxu1 %v5044_v14  ;;  %2522 = vmatprep.subr.bf16.mxu0 %v5044_v14 }
 0x2b0   :  { %2412 = vmatpush1.bf16.msra.mxu1 %v4947_v28  ;;  %2523 = vmatpush1.bf16.msra.mxu0 %v4949_v29 }
 0x2b1   :  { %2640 = vmatprep.subr.bf16.mxu1 %v5044_v14  ;;  %2524 = vmatprep.subr.bf16.mxu0 %v5044_v14 }
 0x2b4   :  { %2525 = vmatpush1.bf16.msra.mxu0 %v4951_v30 }
 0x2b5   :  { %2526 = vmatprep.subr.bf16.mxu0 %v5044_v14 }
 0x2b8   :  { %2527 = vmatpush1.bf16.msra.mxu0 %v4953_v31 }
 0x2b9   :  { %2528 = vmatprep.subr.bf16.mxu0 %v5044_v14 }
 0x2bc   :  { %2529 = vmatpush1.bf16.msra.mxu0 %v4955_v32 }
 0x2bd   :  { %2530 = vmatprep.subr.bf16.mxu0 %v5044_v14 }
 0x2c0   :  { %2531 = vmatpush1.bf16.msra.mxu0 %v4957_v33 }
 0x2c1   :  { %2532 = vmatprep.subr.bf16.mxu0 %v5044_v14 }
 0x2c4   :  { %2533 = vmatpush1.bf16.msra.mxu0 %v4959_v34 }
 0x2c5   :  { %2534 = vmatprep.subr.bf16.mxu0 %v5044_v14 }
 0x2c8   :  { %2535 = vmatpush1.bf16.msra.mxu0 %v4961_v35 }
 0x2c9   :  { %2881 = vmatprep.subr.bf16.mxu0 %v5044_v14 }
 0x2cb   :  { %v5923_v36 = vpop.f32.mrb[32].mxu0 }
 0x2cc   :  { %v1812_v38 = vpop.f32.mrb[33].mxu0 }
 0x2cd   :  { %v1813_v39 = vpop.f32.mrb[34].mxu0 }
 0x2ce   :  { %v1814_v40 = vpop.f32.mrb[35].mxu0  ;;  %v6031_v39 = vld [vmem:[%s6327_s4] sm:$0x1f]  ;;  %s5052_s4 = smov 56  }
 0x2ea   :  { %v2335_v43 = vpop.permute.xlu1 %2334 }
 0x2eb   :  { %v2336_v44 = vsel %vm1636_vm7, %v2333_v42, %v2335_v43  ;;  %4153 = vmatprep.mubr.msk.bf16.mxu1 %vm1628_vm4, %v2335_v43  ;;  %v2456_v55 = vpop.permute.xlu0 %2455 }
 0x2ec   :  { %2428 = vmatmul.mubr.bf16.vlgmr.msra.gmra.mrb[40].mxu1 %v2336_v44 }
 0x2ed   :  { %2641 = vmatpush1.bf16.msra.mxu1 %v4950_v41  ;;  %v2724_v41 = vrot.slane %v6031_v39, %v5634_v63 }
 0x2ee   :  { %2642 = vmatprep.subr.bf16.mxu1 %v5044_v14 }
 0x2ef   :  { %v2578_v3 = vpop.permute.xlu0 %2577 }
 0x2f1   :  { %2643 = vmatpush1.bf16.msra.mxu1 %v4952_v45  ;;  %v2728_v45 = vrot.slane %v6031_v39, %v5686_v37 }
 0x2f2   :  { %2644 = vmatprep.subr.bf16.mxu1 %v5044_v14 }
 0x2f5   :  { %2645 = vmatpush1.bf16.msra.mxu1 %v4954_v46 }
 0x2f6   :  { %2646 = vmatprep.subr.bf16.mxu1 %v5044_v14 }
 0x2f9   :  { %2647 = vmatpush1.bf16.msra.mxu1 %v4956_v48 }
 0x2fa   :  { %2648 = vmatprep.subr.bf16.mxu1 %v5044_v14 }
 0x2fd   :  { %2649 = vmatpush1.bf16.msra.mxu1 %v4958_v50 }
 0x2fe   :  { %2650 = vmatprep.subr.bf16.mxu1 %v5044_v14 }
 0x301   :  { %2651 = vmatpush1.bf16.msra.mxu1 %v4960_v51 }
 0x302   :  { %2652 = vmatprep.subr.bf16.mxu1 %v5044_v14 }
 0x305   :  { %2653 = vmatpush1.bf16.msra.mxu1 %v4962_v52  ;;  %v2458_v56 = vpop.permute.xlu1 %2457 }
 0x306   :  { %v2459_v58 = vsel %vm1632_vm6, %v2456_v55, %v2458_v56  ;;  %4181 = vmatprep.mubr.msk.bf16.mxu0 %vm1628_vm4, %v2458_v56  ;;  %2654 = vmatprep.subr.bf16.mxu1 %v5044_v14 }
 0x307   :  { %2551 = vmatmul.mubr.bf16.vlgmr.msra.gmra.mrb[44].mxu0 %v2459_v58 }
 0x308   :  { %2882 = vmatpush1.bf16.msra.mxu0 %v4965_v53 }
 0x309   :  { %2655 = vmatpush1.bf16.msra.mxu1 %v4963_v54  ;;  %v2580_v61 = vpop.permute.xlu1 %2579  ;;  %2883 = vmatprep.subr.bf16.mxu0 %v5044_v14 }
 0x30a   :  { %4209 = vmatprep.mubr.msk.bf16.mxu1 %vm1628_vm4, %v2580_v61  ;;  %2656 = vmatprep.subr.bf16.mxu1 %v5044_v14  ;;  %v2581_v2 = vsel %vm1628_vm4, %v2578_v3, %v2580_v61 }
 0x30c   :  { %2884 = vmatpush1.bf16.msra.mxu0 %v4966_v59 }
 0x30d   :  { %2657 = vmatpush1.bf16.msra.mxu1 %v4964_v60  ;;  %2885 = vmatprep.subr.bf16.mxu0 %v5044_v14 }
 0x30e   :  { %3049 = vmatprep.subr.bf16.mxu1 %v5044_v14 }
 0x310   :  { %2673 = vmatmul.mubr.bf16.vlgmr.msra.gmra.mrb[44].mxu1 %v2581_v2  ;;  %2886 = vmatpush1.bf16.msra.mxu0 %v4967_v0 }
 0x311   :  { %2887 = vmatprep.subr.bf16.mxu0 %v5044_v14 }
 0x314   :  { %2888 = vmatpush1.bf16.msra.mxu0 %v4968_v4 }
 0x315   :  { %2889 = vmatprep.subr.bf16.mxu0 %v5044_v14 }
 0x318   :  { %2890 = vmatpush1.bf16.msra.mxu0 %v4969_v5  ;;  %v4979_v5 = vld [vmem:[%s6326_s5 + $0x6c] sm:$0xff]  }
 0x319   :  { %2891 = vmatprep.subr.bf16.mxu0 %v5044_v14  ;;  %3050 = vmatpush1.bf16.msra.mxu1 %v4979_v5  ;;  %v5001_v5 = vld [vmem:[%s6326_s5 + $0x14c] sm:$0xff]  }
 0x31a   :  { %3051 = vmatprep.subr.bf16.mxu1 %v5044_v14 }
 0x31c   :  { %2892 = vmatpush1.bf16.msra.mxu0 %v4970_v6  ;;  %v4980_v6 = vld [vmem:[%s6326_s5 + $0x74] sm:$0xff]  }
 0x31d   :  { %2893 = vmatprep.subr.bf16.mxu0 %v5044_v14  ;;  %3052 = vmatpush1.bf16.msra.mxu1 %v4980_v6 }
 0x31e   :  { %3053 = vmatprep.subr.bf16.mxu1 %v5044_v14 }
 0x320   :  { %2894 = vmatpush1.bf16.msra.mxu0 %v4971_v9  ;;  %v4981_v9 = vld [vmem:[%s6326_s5 + $0x7c] sm:$0xff]  }
 0x321   :  { %2895 = vmatprep.subr.bf16.mxu0 %v5044_v14  ;;  %3054 = vmatpush1.bf16.msra.mxu1 %v4981_v9 }
 0x322   :  { %3055 = vmatprep.subr.bf16.mxu1 %v5044_v14 }
 0x324   :  { %2896 = vmatpush1.bf16.msra.mxu0 %v4972_v12  ;;  %v4995_v12 = vld [vmem:[%s6326_s5 + $0xf0] sm:$0xff]  }
 0x325   :  { %2897 = vmatprep.subr.bf16.mxu0 %v5044_v14 }
 0x328   :  { %2898 = vmatpush1.bf16.msra.mxu0 %v4973_v15  ;;  %v4983_v15 = vld [vmem:[%s6326_s5 + $0x8c] sm:$0xff]  }
 0x329   :  { %2899 = vmatprep.subr.bf16.mxu0 %v5044_v14 }
 0x32c   :  { %2900 = vmatpush1.bf16.msra.mxu0 %v4974_v16  ;;  %v4997_v16 = vld [vmem:[%s6326_s5 + $0xf8] sm:$0xff]  }
 0x32d   :  { %2901 = vmatprep.subr.bf16.mxu0 %v5044_v14 }
 0x330   :  { %2902 = vmatpush1.bf16.msra.mxu0 %v4975_v17  ;;  %v4984_v17 = vld [vmem:[%s6326_s5 + $0x94] sm:$0xff]  }
 0x331   :  { %2903 = vmatprep.subr.bf16.mxu0 %v5044_v14 }
 0x334   :  { %2904 = vmatpush1.bf16.msra.mxu0 %v4976_v47  ;;  %v4985_v47 = vld [vmem:[%s6326_s5 + $0x9c] sm:$0xff]  }
 0x335   :  { %2905 = vmatprep.subr.bf16.mxu0 %v5044_v14 }
 0x338   :  { %2906 = vmatpush1.bf16.msra.mxu0 %v4977_v20  ;;  %v4988_v20 = vld [vmem:[%s6326_s5 + $0xb4] sm:$0xff]  }
 0x339   :  { %2907 = vmatprep.subr.bf16.mxu0 %v5044_v14 }
 0x33c   :  { %2908 = vmatpush1.bf16.msra.mxu0 %v2879_v24  ;;  %v4996_v24 = vld [vmem:[%s6326_s5 + $0xd4] ss:$0 sps:$4 sm:$0xff]  }
 0x33d   :  { %3215 = vmatprep.subr.bf16.mxu0 %v5044_v14 }
 0x33e   :  { %v1935_v7 = vpop.f32.mrb[32].mxu1 }
 0x33f   :  { %v1937_v8 = vpop.f32.mrb[33].mxu1  ;;  %2681 = vrot.lane.b32.xlu0 %v1935_v7, %s5049_s1  ;;  %v4989_v7 = vld [vmem:[%s6326_s5 + $0xd8] sm:$0xff]  }
 0x340   :  { %v1938_v10 = vpop.f32.mrb[34].mxu1  ;;  %v4991_v8 = vld [vmem:[%s6326_s5 + $0xe0] sm:$0xff]  }
 0x341   :  { %v1939_v11 = vpop.f32.mrb[35].mxu1  ;;  %v4993_v10 = vld [vmem:[%s6326_s5 + $0xe8] sm:$0xff]  }
 0x342   :  { %v4982_v11 = vld [vmem:[%s6326_s5 + $0x84] sm:$0xff]  }
 0x343   :  { %3056 = vmatpush1.bf16.msra.mxu1 %v4982_v11  ;;  %v5005_v11 = vld [vmem:[%s6326_s5 + $0x15c] sm:$0xff]  }
 0x344   :  { %3057 = vmatprep.subr.bf16.mxu1 %v5044_v14 }
 0x347   :  { %3058 = vmatpush1.bf16.msra.mxu1 %v4983_v15  ;;  %v5009_v15 = vld [vmem:[%s6326_s5 + $0x16c] sm:$0xff]  }
 0x348   :  { %3059 = vmatprep.subr.bf16.mxu1 %v5044_v14 }
 0x34b   :  { %3060 = vmatpush1.bf16.msra.mxu1 %v4984_v17  ;;  %v5013_v17 = vld [vmem:[%s6326_s5 + $0x17c] sm:$0xff]  }
 0x34c   :  { %3061 = vmatprep.subr.bf16.mxu1 %v5044_v14 }
 0x34f   :  { %3062 = vmatpush1.bf16.msra.mxu1 %v4985_v47 }
 0x350   :  { %3063 = vmatprep.subr.bf16.mxu1 %v5044_v14 }
 0x356   :  { %v2059_v18 = vpop.f32.mrb[36].mxu0 }
 0x357   :  { %2685 = vrot.lane.b32.xlu1 %v2059_v18, %s5045_s22  ;;  %v2061_v19 = vpop.f32.mrb[37].mxu0  ;;  %v4986_v18 = vld [vmem:[%s6326_s5 + $0xa4] sm:$0xff]  }
 0x358   :  { %v2062_v21 = vpop.f32.mrb[38].mxu0  ;;  %3064 = vmatpush1.bf16.msra.mxu1 %v4986_v18  ;;  %v4987_v19 = vld [vmem:[%s6326_s5 + $0xac] sm:$0xff]   ;;  %v5015_v18 = vld [vmem:[%s6326_s5 + $0x184] sm:$0xff]  }
 0x359   :  { %v2063_v22 = vpop.f32.mrb[39].mxu0  ;;  %3065 = vmatprep.subr.bf16.mxu1 %v5044_v14  ;;  %v4990_v21 = vld [vmem:[%s6326_s5 + $0xbc] sm:$0xff]  }
 0x35a   :  { %v4992_v22 = vld [vmem:[%s6326_s5 + $0xc4] sm:$0xff]  }
 0x35c   :  { %3066 = vmatpush1.bf16.msra.mxu1 %v4987_v19 }
 0x35d   :  { %3067 = vmatprep.subr.bf16.mxu1 %v5044_v14 }
 0x360   :  { %3068 = vmatpush1.bf16.msra.mxu1 %v4988_v20 }
 0x361   :  { %3069 = vmatprep.subr.bf16.mxu1 %v5044_v14 }
 0x362   :  { %v2182_v25 = vpop.f32.mrb[36].mxu1 }
 0x363   :  { %v2184_v49 = vpop.f32.mrb[37].mxu1  ;;  %2689 = vrot.lane.b32.xlu0 %v2182_v25, %s5050_s26  ;;  %v3047_v25 = vsel %vm2877_vm8, %v4996_v24, 0 }
 0x364   :  { %v2185_v27 = vpop.f32.mrb[38].mxu1  ;;  %3070 = vmatpush1.bf16.msra.mxu1 %v4990_v21  ;;  %v5016_v21 = vld [vmem:[%s6326_s5 + $0x18c] sm:$0xff]  }
 0x365   :  { %v2186_v28 = vpop.f32.mrb[39].mxu1  ;;  %3071 = vmatprep.subr.bf16.mxu1 %v5044_v14  ;;  %v2732_v27 = vrot.slane %v6031_v39, %v5709_v57 }
 0x366   :  { %v4998_v28 = vld [vmem:[%s6326_s5 + $0x100] sm:$0xff]  }
 0x368   :  { %3072 = vmatpush1.bf16.msra.mxu1 %v4992_v22 }
 0x369   :  { %3073 = vmatprep.subr.bf16.mxu1 %v5044_v14 }
 0x36c   :  { %3074 = vmatpush1.bf16.msra.mxu1 %v4994_v23 }
 0x36d   :  { %3075 = vmatprep.subr.bf16.mxu1 %v5044_v14 }
 0x370   :  { %3076 = vmatpush1.bf16.msra.mxu1 %v3047_v25 }
 0x371   :  { %3381 = vmatprep.subr.bf16.mxu1 %v5044_v14 }
 0x37a   :  { %v2306_v29 = vpop.f32.mrb[40].mxu0 }
 0x37b   :  { %2693 = vrot.lane.b32.xlu1 %v2306_v29, %s5042_s16  ;;  %v2308_v30 = vpop.f32.mrb[41].mxu0  ;;  %s5053_s16 = smov 120  }
 0x37c   :  { %v2309_v31 = vpop.f32.mrb[42].mxu0 }
 0x37d   :  { %v2310_v32 = vpop.f32.mrb[43].mxu0 }
 0x3b1   :  { %v2682_v40 = vpop.permute.xlu0 %2681 }
 0x3b2   :  { %v2709_v42 = vsel %vm2708_vm9, %v5923_v36, %v2682_v40 }
 0x3b3   :  { %v2746_v43 = vadd.f32 %v2724_v41, %v2709_v42  ;;  %v5004_v41 = vld [vmem:[%s6326_s5 + $0x118] sm:$0xff]   ;;  %v5006_v42 = vld [vmem:[%s6326_s5 + $0x120] sm:$0xff]  }
 0x3b5   :  { %v2751_v50 = vmul.f32 0.01, %v2746_v43 }
 0x3b7   :  { %v2756_v54 = vmax.f32 %v2746_v43, %v2751_v50  ;;  %v5008_v43 = vld [vmem:[%s6326_s5 + $0x128] sm:$0xff]  }
 0x3b9   :  { %v2761_v61 = vpack.c.bf16 %v2756_v54, %v2756_v54 }
 0x3bf   :  { %v2429_v33 = vpop.f32.mrb[40].mxu1 }
 0x3c0   :  { %2697 = vrot.lane.b32.xlu0 %v2429_v33, %s5051_s27  ;;  %v2431_v34 = vpop.f32.mrb[41].mxu1  ;;  %v5000_v33 = vld [vmem:[%s6326_s5 + $0x108] sm:$0xff]  }
 0x3c1   :  { %v2432_v35 = vpop.f32.mrb[42].mxu1 }
 0x3c2   :  { %v2433_v38 = vpop.f32.mrb[43].mxu1  ;;  %v5002_v35 = vld [vmem:[%s6326_s5 + $0x110] sm:$0xff]  }
 0x3c9   :  { %v2686_v44 = vpop.permute.xlu1 %2685 }
 0x3ca   :  { %v2710_v46 = vsel %vm1628_vm4, %v2682_v40, %v2686_v44  ;;  %v5010_v44 = vld [vmem:[%s6326_s5 + $0x130] sm:$0xff]  }
 0x3d5   :  { %v6040_v48 = vpop.permute.xlu0 %2689 }
 0x3d6   :  { %v2712_v51 = vsel %vm2711_vm10, %v2710_v46, %v6040_v48  ;;  %v5014_v46 = vld [vmem:[%s6326_s5 + $0x140] ss:$0 sps:$4 sm:$0xff]  }
 0x3d7   :  { %v2747_v52 = vadd.f32 %v2728_v45, %v2712_v51  ;;  %v5012_v45 = vld [vmem:[%s6326_s5 + $0x138] sm:$0xff]   ;;  %v2740_v51 = vrot.slane %v6031_v39, %v1665_v26 }
 0x3d9   :  { %v2752_v53 = vmul.f32 0.01, %v2747_v52 }
 0x3da   :  { %v2552_v55 = vpop.f32.mrb[44].mxu0 }
 0x3db   :  { %v2757_v56 = vmax.f32 %v2747_v52, %v2752_v53  ;;  %2701 = vrot.lane.b32.xlu1 %v2552_v55, %s5043_s11  ;;  %v2554_v36 = vpop.f32.mrb[45].mxu0  ;;  %v2736_v52 = vrot.slane %v6031_v39, %v1661_v13  ;;  %v4999_v39 = vld [vmem:[%s6326_s5 + $0x144] sm:$0xff]  }
 0x3dc   :  { %v2555_v58 = vpop.f32.mrb[46].mxu0 }
 0x3dd   :  { %v6045_v59 = vpack.c.bf16 %v2757_v56, %v2757_v56  ;;  %v2556_v60 = vpop.f32.mrb[47].mxu0 }
 0x3df   :  { %4224 = vmatprep.mubr.msk.bf16.mxu0 %vm2711_vm10, %v6045_v59  ;;  %2954 = vrot.lane.b32.xlu1 %v6045_v59, %s5052_s4 }
 0x3e0   :  { %2914 = vmatmul.mubr.bf16.vlgmr.msra.gmra.mrb[48].mxu0 %v2761_v61 }
 0x3e1   :  { %3216 = vmatpush1.bf16.msra.mxu0 %v4989_v7 }
 0x3e2   :  { %3217 = vmatprep.subr.bf16.mxu0 %v5044_v14 }
 0x3e3   :  { %v2674_v0 = vpop.f32.mrb[44].mxu1  ;;  %2952 = vrot.lane.b32.xlu1 %v2761_v61, %s5052_s4 }
 0x3e4   :  { %2705 = vrot.lane.b32.xlu0 %v2674_v0, %s5053_s16  ;;  %v2676_v3 = vpop.f32.mrb[45].mxu1 }
 0x3e5   :  { %v2677_v2 = vpop.f32.mrb[46].mxu1  ;;  %3218 = vmatpush1.bf16.msra.mxu0 %v4991_v8 }
 0x3e6   :  { %v2678_v4 = vpop.f32.mrb[47].mxu1  ;;  %3219 = vmatprep.subr.bf16.mxu0 %v5044_v14 }
 0x3e9   :  { %3220 = vmatpush1.bf16.msra.mxu0 %v4993_v10  ;;  %v5003_v10 = vld [vmem:[%s6326_s5 + $0x154] sm:$0xff]  }
 0x3ea   :  { %3221 = vmatprep.subr.bf16.mxu0 %v5044_v14 }
 0x3ed   :  { %3222 = vmatpush1.bf16.msra.mxu0 %v4995_v12  ;;  %v2694_v49 = vpop.permute.xlu1 %2693  ;;  %v5007_v12 = vld [vmem:[%s6326_s5 + $0x164] sm:$0xff]  }
 0x3ee   :  { %3223 = vmatprep.subr.bf16.mxu0 %v5044_v14  ;;  %v2713_v29 = vsel %vm245_vm2, %v6040_v48, %v2694_v49  ;;  %v3213_v48 = vsel %vm2877_vm8, %v5014_v46, 0  ;;  %v5017_v49 = vld [vmem:[%s6326_s5 + $0x194] sm:$0xff]  }
 0x3ef   :  { %v5027_v46 = vld [vmem:[%s6328_s7 + $0x58] sm:$0xff]  }
 0x3f1   :  { %3224 = vmatpush1.bf16.msra.mxu0 %v4997_v16  ;;  %v5011_v16 = vld [vmem:[%s6326_s5 + $0x174] sm:$0xff]  }
 0x3f2   :  { %3225 = vmatprep.subr.bf16.mxu0 %v5044_v14 }
 0x3f5   :  { %3226 = vmatpush1.bf16.msra.mxu0 %v4998_v28  ;;  %v5018_v28 = vld [vmem:[%s6326_s5 + $0x19c] sm:$0xff]  }
 0x3f6   :  { %3227 = vmatprep.subr.bf16.mxu0 %v5044_v14 }
 0x3f9   :  { %3228 = vmatpush1.bf16.msra.mxu0 %v5000_v33 }
 0x3fa   :  { %3229 = vmatprep.subr.bf16.mxu0 %v5044_v14 }
 0x3fd   :  { %3230 = vmatpush1.bf16.msra.mxu0 %v5002_v35 }
 0x3fe   :  { %3231 = vmatprep.subr.bf16.mxu0 %v5044_v14 }
 0x401   :  { %3232 = vmatpush1.bf16.msra.mxu0 %v5004_v41 }
 0x402   :  { %3233 = vmatprep.subr.bf16.mxu0 %v5044_v14 }
 0x405   :  { %3234 = vmatpush1.bf16.msra.mxu0 %v5006_v42  ;;  %v5023_v42 = vld [vmem:[%s6328_s7 + $0x48] sm:$0xff]  }
 0x406   :  { %3235 = vmatprep.subr.bf16.mxu0 %v5044_v14 }
 0x409   :  { %3236 = vmatpush1.bf16.msra.mxu0 %v5008_v43  ;;  %v5024_v43 = vld [vmem:[%s6328_s7 + $0x8] sm:$0xff]  }
 0x40a   :  { %3237 = vmatprep.subr.bf16.mxu0 %v5044_v14 }
 0x40d   :  { %3238 = vmatpush1.bf16.msra.mxu0 %v5010_v44  ;;  %v5025_v44 = vld [vmem:[%s6328_s7 + $0x50] sm:$0xff]  }
 0x40e   :  { %3239 = vmatprep.subr.bf16.mxu0 %v5044_v14 }
 0x411   :  { %3240 = vmatpush1.bf16.msra.mxu0 %v5012_v45  ;;  %v5026_v45 = vld [vmem:[%s6328_s7 + $0x10] sm:$0xff]  }
 0x412   :  { %3241 = vmatprep.subr.bf16.mxu0 %v5044_v14 }
 0x415   :  { %3242 = vmatpush1.bf16.msra.mxu0 %v3213_v48  ;;  %v5028_v48 = vld [vmem:[%s6328_s7 + $0x18] sm:$0xff]  }
 0x432   :  { %v2698_v30 = vpop.permute.xlu0 %2697 }
 0x433   :  { %v2715_v31 = vsel %vm2714_vm11, %v2713_v29, %v2698_v30  ;;  %v5019_v29 = vld [vmem:[%s6326_s5 + $0x1a4] sm:$0xff]  }
 0x434   :  { %v2748_v32 = vadd.f32 %v2732_v27, %v2715_v31 }
 0x436   :  { %v2753_v34 = vmul.f32 0.01, %v2748_v32 }
 0x438   :  { %v2758_v38 = vmax.f32 %v2748_v32, %v2753_v34  ;;  %v5021_v34 = vld [vmem:[%s6328_s7 + $0x40] sm:$0xff]  }
 0x439   :  { %4483 = vmatprep.subr.bf16.mxu0 %v5021_v34 }
 0x43a   :  { %v2763_v40 = vpack.c.bf16 %v2758_v38, %v2758_v38 }
 0x43c   :  { %2956 = vrot.lane.b32.xlu0 %v2763_v40, %s5052_s4 }
 0x440   :  { %3118 = vrot.lane.b32.xlu0 %v6045_v59, %s5054_s14 }
 0x444   :  { %3120 = vrot.lane.b32.xlu0 %v2763_v40, %s5054_s14 }
 0x44d   :  { %v2702_v50 = vpop.permute.xlu1 %2701 }
 0x44e   :  { %v2716_v53 = vsel %vm1625_vm3, %v2698_v30, %v2702_v50  ;;  %v5020_v30 = vld [vmem:[%s6326_s5 + $0x1ac] ss:$0 sps:$4 sm:$0xff]   ;;  %v5029_v50 = vld [vmem:[%s6328_s7 + $0x60] sm:$0xff]  }
 0x44f   :  { %v3379_v31 = vsel %vm2877_vm8, %v5020_v30, 0 }
 0x451   :  { %v2955_v62 = vpop.permute.xlu1 %2954 }
 0x455   :  { %v2953_v13 = vpop.permute.xlu1 %2952 }
 0x456   :  { %v2706_v54 = vpop.permute.xlu0 %2705  ;;  %v2959_v4 = vsel %vm2958_vm13, %v2953_v13, %v2955_v62 }
 0x457   :  { %v2718_v55 = vsel %vm2717_vm12, %v2716_v53, %v2706_v54  ;;  %v2750_v56 = vadd.f32 %v2740_v51, %v2706_v54  ;;  %v5030_v51 = vld [vmem:[%s6328_s7 + $0x20] sm:$0xff]   ;;  %v5031_v53 = vld [vmem:[%s6328_s7 + $0x68] sm:$0xff]  }
 0x458   :  { %v2749_v36 = vadd.f32 %v2736_v52, %v2718_v55 }
 0x459   :  { %v2755_v58 = vmul.f32 0.01, %v2750_v56 }
 0x45a   :  { %v2754_v59 = vmul.f32 0.01, %v2749_v36 }
 0x45b   :  { %v2760_v60 = vmax.f32 %v2750_v56, %v2755_v58  ;;  %v5033_v58 = vld [vmem:[%s6328_s7 + $0x80] sm:$0xff]  }
 0x45c   :  { %v2759_v61 = vmax.f32 %v2749_v36, %v2754_v59  ;;  %v5032_v36 = vld [vmem:[%s6328_s7 + $0x28] sm:$0xff]   ;;  %v5034_v59 = vld [vmem:[%s6328_s7 + $0x70] sm:$0xff]  }
 0x45d   :  { %v2765_v0 = vpack.c.bf16 %v2760_v60, %v2760_v60  ;;  %v5035_v60 = vld [vmem:[%s6328_s7 + $0x30] sm:$0xff]  }
 0x45e   :  { %v2764_v3 = vpack.c.bf16 %v2759_v61, %v2759_v61  ;;  %v5036_v61 = vld [vmem:[%s6328_s7 + $0x88] sm:$0xff]  }
 0x45f   :  { %3288 = vrot.lane.b32.xlu0 %v2765_v0, %s5055_s21  ;;  %v5037_v0 = vld [vmem:[%s6328_s7 + $0x78] sm:$0xff]  }
 0x460   :  { %3122 = vrot.lane.b32.xlu1 %v2764_v3, %s5054_s14 }
 0x464   :  { %3286 = vrot.lane.b32.xlu1 %v2764_v3, %s5055_s21  ;;  %v5038_v3 = vld [vmem:[%s6328_s7 + $0x38] sm:$0xff]  }
 0x468   :  { %3284 = vrot.lane.b32.xlu1 %v2763_v40, %s5055_s21 }
 0x4ae   :  { %v2957_v26 = vpop.permute.xlu0 %2956 }
 0x4af   :  { %v2960_v2 = vsel %vm2958_vm13, %v2955_v62, %v2957_v26 }
 0x4b0   :  { %4266 = vmatprep.mubr.msk.bf16.mxu1 %vm2711_vm10, %v2960_v2 }
 0x4b1   :  { %3082 = vmatmul.mubr.bf16.vlgmr.msra.gmra.mrb[48].mxu1 %v2959_v4 }
 0x4b2   :  { %3382 = vmatpush1.bf16.msra.mxu1 %v4999_v39  ;;  %v3119_v47 = vpop.permute.xlu0 %3118  ;;  %v3436_v39 = vld [vmem:[%s6329_s6] sm:$0x7] }
 0x4b3   :  { %v6188_v6 = vpop.f32.mrb[48].mxu0  ;;  %3383 = vmatprep.subr.bf16.mxu1 %v5044_v14  ;;  %v3441_v4 = vrot.slane %v3436_v39, %v5634_v63 }
 0x4b4   :  { %v2917_v7 = vpop.f32.mrb[49].mxu0 }
 0x4b5   :  { %v2918_v8 = vpop.f32.mrb[50].mxu0 }
 0x4b6   :  { %v2919_v9 = vpop.f32.mrb[51].mxu0  ;;  %3384 = vmatpush1.bf16.msra.mxu1 %v5001_v5  ;;  %v3121_v19 = vpop.permute.xlu0 %3120 }
 0x4b7   :  { %3385 = vmatprep.subr.bf16.mxu1 %v5044_v14  ;;  %v3125_v23 = vsel %vm3124_vm14, %v3119_v47, %v3121_v19  ;;  %v3449_v9 = vrot.slane %v3436_v39, %v5709_v57 }
 0x4ba   :  { %3386 = vmatpush1.bf16.msra.mxu1 %v5003_v10  ;;  %v3445_v10 = vrot.slane %v3436_v39, %v5686_v37 }
 0x4bb   :  { %3387 = vmatprep.subr.bf16.mxu1 %v5044_v14 }
 0x4be   :  { %3388 = vmatpush1.bf16.msra.mxu1 %v5005_v11 }
 0x4bf   :  { %3389 = vmatprep.subr.bf16.mxu1 %v5044_v14 }
 0x4c2   :  { %3390 = vmatpush1.bf16.msra.mxu1 %v5007_v12 }
 0x4c3   :  { %3391 = vmatprep.subr.bf16.mxu1 %v5044_v14 }
 0x4c6   :  { %3392 = vmatpush1.bf16.msra.mxu1 %v5009_v15 }
 0x4c7   :  { %3393 = vmatprep.subr.bf16.mxu1 %v5044_v14 }
 0x4ca   :  { %3394 = vmatpush1.bf16.msra.mxu1 %v5011_v16 }
 0x4cb   :  { %3395 = vmatprep.subr.bf16.mxu1 %v5044_v14 }
 0x4ce   :  { %3396 = vmatpush1.bf16.msra.mxu1 %v5013_v17 }
 0x4cf   :  { %3397 = vmatprep.subr.bf16.mxu1 %v5044_v14 }
 0x4d1   :  { %v3289_v24 = vpop.permute.xlu0 %3288 }
 0x4d2   :  { %3398 = vmatpush1.bf16.msra.mxu1 %v5015_v18  ;;  %v3123_v20 = vpop.permute.xlu1 %3122 }
 0x4d3   :  { %v3126_v22 = vsel %vm3124_vm14, %v3121_v19, %v3123_v20  ;;  %3399 = vmatprep.subr.bf16.mxu1 %v5044_v14 }
 0x4d4   :  { %4308 = vmatprep.mubr.msk.bf16.mxu0 %vm2711_vm10, %v3126_v22 }
 0x4d5   :  { %3248 = vmatmul.mubr.bf16.vlgmr.msra.gmra.mrb[52].mxu0 %v3125_v23 }
 0x4d6   :  { %3400 = vmatpush1.bf16.msra.mxu1 %v5016_v21  ;;  %v3287_v25 = vpop.permute.xlu1 %3286 }
 0x4d7   :  { %v3292_v27 = vsel %vm3290_vm15, %v3287_v25, %v3289_v24  ;;  %3401 = vmatprep.subr.bf16.mxu1 %v5044_v14 }
 0x4d8   :  { %4350 = vmatprep.mubr.msk.bf16.mxu1 %vm2711_vm10, %v3292_v27 }
 0x4da   :  { %3402 = vmatpush1.bf16.msra.mxu1 %v5017_v49  ;;  %v3285_v32 = vpop.permute.xlu1 %3284  ;;  %v4351_v49 = vld [vmem:[%s6330_s8] ss:$0 sm:$0xff] }
 0x4db   :  { %3403 = vmatprep.subr.bf16.mxu1 %v5044_v14  ;;  %v3291_v33 = vsel %vm3290_vm15, %v3285_v32, %v3287_v25 }
 0x4de   :  { %3404 = vmatpush1.bf16.msra.mxu1 %v5018_v28 }
 0x4df   :  { %3405 = vmatprep.subr.bf16.mxu1 %v5044_v14 }
 0x4e2   :  { %3406 = vmatpush1.bf16.msra.mxu1 %v5019_v29 }
 0x4e3   :  { %3407 = vmatprep.subr.bf16.mxu1 %v5044_v14  ;;  %v5022_v14 = vld [vmem:[%s6328_s7] sm:$0xff]  }
 0x4e4   :  { %4484 = vmatpush3.bf16.msra.mxu0 %v5022_v14 }
 0x4e5   :  { %4485 = vmatprep.subr.bf16.mxu0 %v5023_v42 }
 0x4e6   :  { %3408 = vmatpush1.bf16.msra.mxu1 %v3379_v31 }
 0x4e7   :  { %4764 = vmatprep.subr.bf16.mxu1 %v5039_v1 }
 0x4e8   :  { %4486 = vmatpush3.bf16.msra.mxu0 %v5024_v43 }
 0x4e9   :  { %3414 = vmatmul.mubr.bf16.vlgmr.msra.gmra.mrb[52].mxu1 %v3291_v33  ;;  %4487 = vmatprep.subr.bf16.mxu0 %v5025_v44 }
 0x4ea   :  { %4768 = vmatprep.mubr.msk.bf16.mxu1 %vm5040_vm0, %v5039_v1  ;;  %4765 = vmatpush3.bf16.msra.mxu1 %v5033_v58 }
 0x4eb   :  { %4766 = vmatprep.subr.bf16.mxu1 %v5039_v1 }
 0x4ec   :  { %4488 = vmatpush3.bf16.msra.mxu0 %v5026_v45 }
 0x4ed   :  { %4489 = vmatprep.subr.bf16.mxu0 %v5027_v46 }
 0x4ee   :  { %4767 = vmatpush3.bf16.msra.mxu1 %v5036_v61 }
 0x4f0   :  { %4490 = vmatpush3.bf16.msra.mxu0 %v5028_v48 }
 0x4f1   :  { %4491 = vmatprep.subr.bf16.mxu0 %v5029_v50 }
 0x4f4   :  { %4492 = vmatpush3.bf16.msra.mxu0 %v5030_v51 }
 0x4f5   :  { %4493 = vmatprep.subr.bf16.mxu0 %v5031_v53 }
 0x4f8   :  { %4494 = vmatpush3.bf16.msra.mxu0 %v5032_v36 }
 0x4f9   :  { %4495 = vmatprep.subr.bf16.mxu0 %v5034_v59 }
 0x4fc   :  { %4496 = vmatpush3.bf16.msra.mxu0 %v5035_v60 }
 0x4fd   :  { %4497 = vmatprep.subr.bf16.mxu0 %v5037_v0 }
 0x500   :  { %4498 = vmatpush3.bf16.msra.mxu0 %v5038_v3 }
 0x584   :  { %v3083_v35 = vpop.f32.mrb[48].mxu1 }
 0x585   :  { %3422 = vrot.lane.b32.xlu0 %v3083_v35, %s5049_s1  ;;  %v3085_v38 = vpop.f32.mrb[49].mxu1 }
 0x586   :  { %v3086_v40 = vpop.f32.mrb[50].mxu1 }
 0x587   :  { %v3087_v41 = vpop.f32.mrb[51].mxu1 }
 0x5a8   :  { %v3249_v52 = vpop.f32.mrb[52].mxu0 }
 0x5a9   :  { %3426 = vrot.lane.b32.xlu1 %v3249_v52, %s5045_s22  ;;  %v3251_v54 = vpop.f32.mrb[53].mxu0 }
 0x5aa   :  { %v3252_v55 = vpop.f32.mrb[54].mxu0 }
 0x5ab   :  { %v3253_v56 = vpop.f32.mrb[55].mxu0 }
 0x5bc   :  { %v3415_v62 = vpop.f32.mrb[52].mxu1 }
 0x5bd   :  { %3430 = vrot.lane.b32.xlu0 %v3415_v62, %s5050_s26  ;;  %v3417_v1 = vpop.f32.mrb[53].mxu1 }
 0x5be   :  { %v3418_v13 = vpop.f32.mrb[54].mxu1 }
 0x5bf   :  { %v3419_v26 = vpop.f32.mrb[55].mxu1 }
 0x5f7   :  { %v3423_v2 = vpop.permute.xlu0 %3422 }
 0x5f8   :  { %v3433_v5 = vsel %vm2708_vm9, %v6188_v6, %v3423_v2 }
 0x5f9   :  { %v3453_v7 = vadd.f32 %v3441_v4, %v3433_v5 }
 0x5fb   :  { %v3456_v15 = vmul.f32 0.01, %v3453_v7 }
 0x5fd   :  { %v3459_v63 = vmax.f32 %v3453_v7, %v3456_v15 }
 0x5ff   :  { %v3462_v23 = vpack.c.bf16 %v3459_v63, %v3459_v63 }
 0x61b   :  { %v3427_v8 = vpop.permute.xlu1 %3426 }
 0x61c   :  { %v3434_v11 = vsel %vm1628_vm4, %v3423_v2, %v3427_v8 }
 0x62f   :  { %v3431_v12 = vpop.permute.xlu0 %3430 }
 0x630   :  { %v3435_v16 = vsel %vm2711_vm10, %v3434_v11, %v3431_v12  ;;  %v3455_v17 = vadd.f32 %v3449_v9, %v3431_v12 }
 0x631   :  { %v3454_v47 = vadd.f32 %v3445_v10, %v3435_v16 }
 0x632   :  { %v3458_v18 = vmul.f32 0.01, %v3455_v17 }
 0x633   :  { %v3457_v19 = vmul.f32 0.01, %v3454_v47 }
 0x634   :  { %v3461_v20 = vmax.f32 %v3455_v17, %v3458_v18 }
 0x635   :  { %v3460_v21 = vmax.f32 %v3454_v47, %v3457_v19 }
 0x636   :  { %v3464_v6 = vpack.c.bf16 %v3461_v20, %v3461_v20 }
 0x637   :  { %v3463_v22 = vpack.c.bf16 %v3460_v21, %v3460_v21 }
 0x638   :  { %4769 = vmatmul.mubr.msk.bf16.vlgmr.msra.gmra.mrb[56].mxu1 %vm245_vm2, %v3464_v6 }
 0x639   :  { %3651 = vmatprep.mubr.bf16.mxu0 %v3463_v22 }
 0x63a   :  { %3652 = vmatmul.mubr.bf16.vlgmr.msra.gmra.mrb[56].mxu0 %v3462_v23 }
 0x70b   :  { %v3693_v37 = vpop.f32.mrb[56].mxu1 }
 0x70c   :  { %v4770_v57 = vpop.f32.mrb[57].mxu1 }
 0x70d   :  { %v4499_v24 = vpop.f32.mrb[56].mxu0  ;;  %v3696_v25 = vpop.f32.mrb[58].mxu1 }
 0x70e   :  { %v4500_v27 = vpop.f32.mrb[57].mxu0  ;;  %v4771_v28 = vpop.f32.mrb[59].mxu1 }
 0x70f   :  { %v4501_v29 = vadd.f32 %v4500_v27, %v4499_v24  ;;  %v4502_v30 = vpop.f32.mrb[58].mxu0 }
 0x710   :  { %v4503_v31 = vpop.f32.mrb[59].mxu0 }
 0x711   :  { %v3654_v32 = vadd.f32 %v4501_v29, %v4351_v49 }
 0x713   :  { %v3694_v33 = vadd.f32 %v3693_v37, %v3654_v32 }
 0x715   :  { %3699 = vst [vmem:[%s6331_s9] sm:$0xff] %v3694_v33 }

</bundles_post_ra>
